<compile_context>
chip_gen: v7x
topology: tpu7x:2x2x1
jax: 0.10.0
libtpu: 0.0.40
codegen_flags: <defaults>
</compile_context>

<pallas_src>
import math
import functools

import jax
import jax.numpy as jnp
import numpy as np
from jax.experimental import pallas as pl
from jax.experimental.pallas import tpu as pltpu


# -----------------------------------------------------------------------------
# Fused kernel: all layers + final LayerNorm
# -----------------------------------------------------------------------------
def fused_forward_kernel(
    x_ref,        # (B*S, D)   embedded input (+pos), constant block -> fetched once
    wqkv_ref,     # (1, D, 3D) this layer's fused QKV weight (scale folded into Q)
    bqkv_ref,     # (1, 1, 3D)
    wo_ref,       # (1, D, D)
    w1_ref,       # (1, D, F)
    b1_ref,       # (1, 1, F)
    w2_ref,       # (1, F, D)
    vecs_ref,     # (1, 6, D)  rows: [ln1_g, ln1_b, ln2_g, ln2_b, bo, b2]
    fin_ref,      # (2, D)     final LayerNorm [gamma, beta]
    o_ref,        # (B*S, D)   resident across the layer grid axis
    *, batch, seq, n_heads, d_head,
):
    layer = pl.program_id(0)
    D = n_heads * d_head
    BS = batch * seq

    # Initialize the resident activation from the (embed + pos) input once.
    @pl.when(layer == 0)
    def _init():
        o_ref[...] = x_ref[...]

    x = o_ref[...]  # (BS, D) f32, previous layer's output

    def layer_norm(t, g, b):
        mu = jnp.mean(t, axis=-1, keepdims=True)
        var = jnp.mean((t - mu) ** 2, axis=-1, keepdims=True)  # biased, as torch
        return (t - mu) * jax.lax.rsqrt(var + 1e-5) * g + b

    vecs = vecs_ref[0]                     # (6, D)
    g1 = vecs[0:1, :]
    be1 = vecs[1:2, :]
    g2 = vecs[2:3, :]
    be2 = vecs[3:4, :]
    bo = vecs[4:5, :]
    b2 = vecs[5:6, :]

    # --- multi-head self attention -------------------------------------------
    # Fused QKV projection over the flattened (B*S) M dimension.
    qkv = jnp.dot(x, wqkv_ref[0], preferred_element_type=jnp.float32) + bqkv_ref[0]
    qkv = qkv.reshape(batch, seq, 3 * D)   # major-dim split only (layout-free)

    wo = wo_ref[0]                         # (D, D)
    acc = jnp.zeros((BS, D), jnp.float32)
    for h in range(n_heads):               # static unroll; each iter is B-batched
        lo = h * d_head
        q_h = qkv[:, :, lo:lo + d_head]                    # (B, S, dh)
        k_h = qkv[:, :, D + lo:D + lo + d_head]            # (B, S, dh)
        v_h = qkv[:, :, 2 * D + lo:2 * D + lo + d_head]    # (B, S, dh)
        # scale already folded into Wq/bq
        s = jnp.einsum("bqd,bkd->bqk", q_h, k_h,
                       preferred_element_type=jnp.float32)  # (B, S, S)
        s = s - jnp.max(s, axis=-1, keepdims=True)
        p = jnp.exp(s)
        p = p / jnp.sum(p, axis=-1, keepdims=True)
        c = jnp.einsum("bqk,bkd->bqd", p, v_h,
                       preferred_element_type=jnp.float32)  # (B, S, dh)
        # Fold the output projection per head: avoids a lane-dim concatenate.
        acc = acc + jnp.dot(c.reshape(BS, d_head), wo[lo:lo + d_head, :],
                            preferred_element_type=jnp.float32)
    attn = acc + bo                        # (BS, D)

    # --- residual + norm1 -----------------------------------------------------
    x1 = layer_norm(x + attn, g1, be1)

    # --- feed forward ---------------------------------------------------------
    h1 = jnp.maximum(
        jnp.dot(x1, w1_ref[0], preferred_element_type=jnp.float32) + b1_ref[0], 0.0)
    ffo = jnp.dot(h1, w2_ref[0], preferred_element_type=jnp.float32) + b2

    # --- residual + norm2 -----------------------------------------------------
    x2 = layer_norm(x1 + ffo, g2, be2)
    o_ref[...] = x2

    # Final model LayerNorm, fused on the last layer iteration.
    @pl.when(layer == pl.num_programs(0) - 1)
    def _final():
        fin = fin_ref[...]                 # (2, D)
        o_ref[...] = layer_norm(x2, fin[0:1, :], fin[1:2, :])


# -----------------------------------------------------------------------------
# Wrapper
# -----------------------------------------------------------------------------
def progen_forward(tokens, emb, pe, stacked, fin, *, n_heads):
    """tokens: (B, S) int32.  Returns (logits (B, S, D), None)."""
    wqkv, bqkv, wo, w1, b1, w2, vecs = stacked
    n_layers, D, _ = wqkv.shape
    B, S = tokens.shape
    d_head = D // n_heads
    BS = B * S

    # Embedding lookup + positional add in plain JAX (glue).
    # NOTE: reproduces the PyTorch quirk exactly — the model feeds (B, S, D)
    # into a PositionalEncoding written for (S, B, D), so pe[:B] of shape
    # (B, 1, D) is broadcast-added: every position of batch row b gets pe[b].
    x = emb[tokens] + pe[:B]
    x = x.reshape(BS, D).astype(jnp.float32)

    def full(a):
        return pl.BlockSpec(a.shape, lambda l: (0,) * a.ndim)

    def per_layer(a):
        return pl.BlockSpec((1,) + a.shape[1:],
                            lambda l: (l,) + (0,) * (a.ndim - 1))

    out = pl.pallas_call(
        functools.partial(fused_forward_kernel, batch=B, seq=S,
                          n_heads=n_heads, d_head=d_head),
        out_shape=jax.ShapeDtypeStruct((BS, D), jnp.float32),
        grid_spec=pltpu.PrefetchScalarGridSpec(
            num_scalar_prefetch=0,
            grid=(n_layers,),
            in_specs=[
                full(x),
                per_layer(wqkv), per_layer(bqkv), per_layer(wo),
                per_layer(w1), per_layer(b1), per_layer(w2),
                per_layer(vecs),
                full(fin),
            ],
            out_specs=pl.BlockSpec((BS, D), lambda l: (0, 0)),
        ),
        # Layer axis is a sequential dependence (activation carried in o_ref).
        compiler_params=pltpu.CompilerParams(dimension_semantics=("arbitrary",)),
    )(x, wqkv, bqkv, wo, w1, b1, w2, vecs, fin)

    # TODO(synk): cross-entropy loss branch (target is not None) not implemented;
    # forward is called with target=None so it returns (logits, None).
    return out.reshape(B, S, D), None


# -----------------------------------------------------------------------------
# Parameter construction (deterministic, synthetic) + stacking
# -----------------------------------------------------------------------------
def make_positional_encoding(d_model, max_len):
    # Matches torch PositionalEncoding exactly: pe has shape (max_len, 1, d_model).
    pe = np.zeros((max_len, d_model), dtype=np.float32)
    position = np.arange(0, max_len, dtype=np.float32)[:, None]
    div_term = np.exp(
        np.arange(0, d_model, 2, dtype=np.float32) * (-math.log(10000.0) / d_model)
    )
    pe[:, 0::2] = np.sin(position * div_term)
    pe[:, 1::2] = np.cos(position * div_term)
    return jnp.asarray(pe)[:, None, :]  # (max_len, 1, d_model)


def make_params(key, vocab_size, n_layers, n_heads, d_model, d_ff):
    keys = jax.random.split(key, 1 + 10 * n_layers)
    emb = 0.02 * jax.random.normal(keys[0], (vocab_size, d_model), jnp.float32)

    def lin(k, fan_in, fan_out):
        bound = 1.0 / math.sqrt(fan_in)
        kw, kb = jax.random.split(k)
        w = jax.random.uniform(kw, (fan_in, fan_out), jnp.float32, -bound, bound)
        b = jax.random.uniform(kb, (1, fan_out), jnp.float32, -bound, bound)
        return w, b

    layers = []
    for i in range(n_layers):
        lk = keys[1 + 10 * i: 1 + 10 * (i + 1)]
        wq, bq = lin(lk[0], d_model, d_model)
        wk, bk = lin(lk[1], d_model, d_model)
        wv, bv = lin(lk[2], d_model, d_model)
        wo, bo = lin(lk[3], d_model, d_model)
        w1, b1 = lin(lk[4], d_model, d_ff)
        w2, b2 = lin(lk[5], d_ff, d_model)
        layers.append(dict(
            wq=wq, bq=bq, wk=wk, bk=bk, wv=wv, bv=bv, wo=wo, bo=bo,
            g1=jnp.ones((1, d_model), jnp.float32),
            be1=jnp.zeros((1, d_model), jnp.float32),
            w1=w1, b1=b1, w2=w2, b2=b2,
            g2=jnp.ones((1, d_model), jnp.float32),
            be2=jnp.zeros((1, d_model), jnp.float32),
        ))
    final_ln = (jnp.ones((1, d_model), jnp.float32),
                jnp.zeros((1, d_model), jnp.float32))
    return emb, layers, final_ln


def stack_block_params(layers, d_head):
    """Stack per-layer dicts into (n_layers, ...) arrays for the fused kernel.

    The attention scale 1/sqrt(d_head) is folded into Wq / bq (exact math).
    """
    scale = 1.0 / math.sqrt(d_head)
    wqkv = jnp.stack([jnp.concatenate(
        [p["wq"] * scale, p["wk"], p["wv"]], axis=1) for p in layers])      # (L, D, 3D)
    bqkv = jnp.stack([jnp.concatenate(
        [p["bq"] * scale, p["bk"], p["bv"]], axis=1) for p in layers])      # (L, 1, 3D)
    wo = jnp.stack([p["wo"] for p in layers])                               # (L, D, D)
    w1 = jnp.stack([p["w1"] for p in layers])                               # (L, D, F)
    b1 = jnp.stack([p["b1"] for p in layers])                               # (L, 1, F)
    w2 = jnp.stack([p["w2"] for p in layers])                               # (L, F, D)
    vecs = jnp.stack([jnp.concatenate(
        [p["g1"], p["be1"], p["g2"], p["be2"], p["bo"], p["b2"]], axis=0)
        for p in layers])                                                   # (L, 6, D)
    return wqkv, bqkv, wo, w1, b1, w2, vecs


# -----------------------------------------------------------------------------
# Pure-JAX reference (for correctness check)
# -----------------------------------------------------------------------------
def ref_forward(tokens, emb, pe, layers, final_ln, *, n_heads):
    B, S = tokens.shape
    D = emb.shape[1]
    dh = D // n_heads

    def ln(t, g, b):
        mu = t.mean(-1, keepdims=True)
        var = ((t - mu) ** 2).mean(-1, keepdims=True)
        return (t - mu) / jnp.sqrt(var + 1e-5) * g + b

    x = emb[tokens] + pe[:B]
    for p in layers:
        q = (x @ p["wq"] + p["bq"]).reshape(B, S, n_heads, dh).transpose(0, 2, 1, 3)
        k = (x @ p["wk"] + p["bk"]).reshape(B, S, n_heads, dh).transpose(0, 2, 1, 3)
        v = (x @ p["wv"] + p["bv"]).reshape(B, S, n_heads, dh).transpose(0, 2, 1, 3)
        s = jnp.einsum("bhqd,bhkd->bhqk", q, k) / math.sqrt(dh)
        a = jax.nn.softmax(s, axis=-1)
        o = jnp.einsum("bhqk,bhkd->bhqd", a, v).transpose(0, 2, 1, 3).reshape(B, S, D)
        o = o @ p["wo"] + p["bo"]
        x = ln(x + o, p["g1"], p["be1"])
        f = jnp.maximum(x @ p["w1"] + p["b1"], 0.0) @ p["w2"] + p["b2"]
        x = ln(x + f, p["g2"], p["be2"])
    return ln(x, final_ln[0], final_ln[1])


# -----------------------------------------------------------------------------
if __name__ == "__main__":
    # Small shapes consistent with the module's forward.
    vocab_size, n_layers, n_heads, d_model, d_ff, max_seq_len = 16, 2, 4, 32, 64, 16
    B, S = 2, 8

    key = jax.random.PRNGKey(0)
    k_tok, k_par = jax.random.split(key)
    tokens = jax.random.randint(k_tok, (B, S), 0, vocab_size, dtype=jnp.int32)

    emb, layers, final_ln = make_params(k_par, vocab_size, n_layers, n_heads,
                                        d_model, d_ff)
    pe = make_positional_encoding(d_model, max_seq_len)

    stacked = stack_block_params(layers, d_head=d_model // n_heads)
    fin = jnp.concatenate([final_ln[0], final_ln[1]], axis=0)  # (2, D)

    logits, loss = progen_forward(tokens, emb, pe, stacked, fin, n_heads=n_heads)
    logits = jax.block_until_ready(logits)

    ref = ref_forward(tokens, emb, pe, layers, final_ln, n_heads=n_heads)
    assert logits.shape == (B, S, d_model)
    assert loss is None
    np.testing.assert_allclose(np.asarray(logits), np.asarray(ref),
                               rtol=1e-4, atol=1e-4)

    print("KERNEL_OK")
</pallas_src>

<mosaic_0001>
module attributes {stable_mosaic.version = 11 : i64} {
  func.func @fused_forward_kernel(%arg0: i32, %arg1: memref<16x32xf32, #tpu.memory_space<vmem>>, %arg2: memref<1x32x96xf32, #tpu.memory_space<vmem>>, %arg3: memref<1x1x96xf32, #tpu.memory_space<vmem>>, %arg4: memref<1x32x32xf32, #tpu.memory_space<vmem>>, %arg5: memref<1x32x64xf32, #tpu.memory_space<vmem>>, %arg6: memref<1x1x64xf32, #tpu.memory_space<vmem>>, %arg7: memref<1x64x32xf32, #tpu.memory_space<vmem>>, %arg8: memref<1x6x32xf32, #tpu.memory_space<vmem>>, %arg9: memref<2x32xf32, #tpu.memory_space<vmem>>, %arg10: memref<16x32xf32, #tpu.memory_space<vmem>>) attributes {dimension_semantics = [#tpu.dimension_semantics<arbitrary>], iteration_bounds = array<i64: 2>, scalar_prefetch = 0 : i64, scratch_operands = 0 : i64, tpu.core_type = #tpu.core_type<tc>, window_params = [{pipeline_mode = #tpu.pipeline_mode<synchronous>, transform_indices = @transform_0, window_bounds = array<i64: 16, 32>}, {transform_indices = @transform_1, window_bounds = array<i64: 1, 32, 96>}, {transform_indices = @transform_2, window_bounds = array<i64: 1, 1, 96>}, {transform_indices = @transform_3, window_bounds = array<i64: 1, 32, 32>}, {transform_indices = @transform_4, window_bounds = array<i64: 1, 32, 64>}, {transform_indices = @transform_5, window_bounds = array<i64: 1, 1, 64>}, {transform_indices = @transform_6, window_bounds = array<i64: 1, 64, 32>}, {transform_indices = @transform_7, window_bounds = array<i64: 1, 6, 32>}, {pipeline_mode = #tpu.pipeline_mode<synchronous>, transform_indices = @transform_8, window_bounds = array<i64: 2, 32>}, {pipeline_mode = #tpu.pipeline_mode<synchronous>, transform_indices = @transform_9, window_bounds = array<i64: 16, 32>}]} {
    %c0_i32 = arith.constant 0 : i32
    %0 = arith.cmpi eq, %arg0, %c0_i32 : i32
    %1 = arith.extui %0 : i1 to i32
    %c0_i32_0 = arith.constant 0 : i32
    %2 = arith.cmpi ne, %1, %c0_i32_0 : i32
    scf.if %2 {
      %c0_60 = arith.constant 0 : index
      %c0_61 = arith.constant 0 : index
      %161 = vector.load %arg1[%c0_60, %c0_61] : memref<16x32xf32, #tpu.memory_space<vmem>>, vector<16x32xf32>
      %c0_62 = arith.constant 0 : index
      %c0_63 = arith.constant 0 : index
      %162 = vector.load %arg10[%c0_62, %c0_63] : memref<16x32xf32, #tpu.memory_space<vmem>>, vector<16x32xf32>
      tpu.vector_store %arg10[%c0_62, %c0_63], %161 {strides = array<i32>} : memref<16x32xf32, #tpu.memory_space<vmem>>, vector<16x32xf32>,
    } else {
    }
    %c0 = arith.constant 0 : index
    %c0_1 = arith.constant 0 : index
    %3 = vector.load %arg10[%c0, %c0_1] : memref<16x32xf32, #tpu.memory_space<vmem>>, vector<16x32xf32>
    %c0_2 = arith.constant 0 : index
    %c0_3 = arith.constant 0 : index
    %c0_4 = arith.constant 0 : index
    %4 = vector.load %arg8[%c0_2, %c0_3, %c0_4] : memref<1x6x32xf32, #tpu.memory_space<vmem>>, vector<1x6x32xf32>
    %5 = vector.shape_cast %4 : vector<1x6x32xf32> to vector<6x32xf32>
    %6 = vector.extract_strided_slice %5 {offsets = [0, 0], sizes = [1, 32], strides = [1, 1]} : vector<6x32xf32> to vector<1x32xf32>
    %7 = vector.extract_strided_slice %5 {offsets = [1, 0], sizes = [1, 32], strides = [1, 1]} : vector<6x32xf32> to vector<1x32xf32>
    %8 = vector.extract_strided_slice %5 {offsets = [2, 0], sizes = [1, 32], strides = [1, 1]} : vector<6x32xf32> to vector<1x32xf32>
    %9 = vector.extract_strided_slice %5 {offsets = [3, 0], sizes = [1, 32], strides = [1, 1]} : vector<6x32xf32> to vector<1x32xf32>
    %10 = vector.extract_strided_slice %5 {offsets = [4, 0], sizes = [1, 32], strides = [1, 1]} : vector<6x32xf32> to vector<1x32xf32>
    %11 = vector.extract_strided_slice %5 {offsets = [5, 0], sizes = [1, 32], strides = [1, 1]} : vector<6x32xf32> to vector<1x32xf32>
    %c0_5 = arith.constant 0 : index
    %c0_6 = arith.constant 0 : index
    %c0_7 = arith.constant 0 : index
    %12 = vector.load %arg2[%c0_5, %c0_6, %c0_7] : memref<1x32x96xf32, #tpu.memory_space<vmem>>, vector<1x32x96xf32>
    %13 = vector.shape_cast %12 : vector<1x32x96xf32> to vector<32x96xf32>
    %cst = arith.constant dense<0.000000e+00> : vector<16x96xf32>
    %14 = tpu.matmul %3, %13, %cst {dimension_numbers = #tpu.dot_dimension_numbers<[1], [0], [0], [1], [0, 0, 1, 1], [], []>} : vector<16x32xf32>, vector<32x96xf32>, vector<16x96xf32> -> vector<16x96xf32>
    %c0_8 = arith.constant 0 : index
    %c0_9 = arith.constant 0 : index
    %c0_10 = arith.constant 0 : index
    %15 = vector.load %arg3[%c0_8, %c0_9, %c0_10] : memref<1x1x96xf32, #tpu.memory_space<vmem>>, vector<1x1x96xf32>
    %16 = vector.shape_cast %15 : vector<1x1x96xf32> to vector<1x96xf32>
    %17 = vector.broadcast %16 : vector<1x96xf32> to vector<16x96xf32>
    %18 = arith.addf %14, %17 : vector<16x96xf32>
    %19 = vector.shape_cast %18 : vector<16x96xf32> to vector<2x8x96xf32>
    %c0_11 = arith.constant 0 : index
    %c0_12 = arith.constant 0 : index
    %c0_13 = arith.constant 0 : index
    %20 = vector.load %arg4[%c0_11, %c0_12, %c0_13] : memref<1x32x32xf32, #tpu.memory_space<vmem>>, vector<1x32x32xf32>
    %21 = vector.shape_cast %20 : vector<1x32x32xf32> to vector<32x32xf32>
    %cst_14 = arith.constant 0.000000e+00 : f32
    %22 = vector.broadcast %cst_14 : f32 to vector<16x32xf32>
    %23 = vector.extract_strided_slice %19 {offsets = [0, 0, 0], sizes = [2, 8, 8], strides = [1, 1, 1]} : vector<2x8x96xf32> to vector<2x8x8xf32>
    %24 = vector.extract_strided_slice %19 {offsets = [0, 0, 32], sizes = [2, 8, 8], strides = [1, 1, 1]} : vector<2x8x96xf32> to vector<2x8x8xf32>
    %25 = vector.extract_strided_slice %19 {offsets = [0, 0, 64], sizes = [2, 8, 8], strides = [1, 1, 1]} : vector<2x8x96xf32> to vector<2x8x8xf32>
    "tpu.trace_start"() <{level = 10 : i32, message = "bqd,bkd->bqk"}> : () -> ()
    %cst_15 = arith.constant dense<0.000000e+00> : vector<2x8x8xf32>
    %26 = tpu.matmul %23, %24, %cst_15 {dimension_numbers = #tpu.dot_dimension_numbers<[2], [2], [1], [1], [0, 0, 0, 1, 1, 1], [0], [0]>} : vector<2x8x8xf32>, vector<2x8x8xf32>, vector<2x8x8xf32> -> vector<2x8x8xf32>
    "tpu.trace_stop"() : () -> ()
    %cst_16 = arith.constant dense<0xFF800000> : vector<2x8xf32>
    %27 = vector.multi_reduction <maximumf>, %26, %cst_16 [2] : vector<2x8x8xf32> to vector<2x8xf32>
    %28 = vector.shape_cast %27 : vector<2x8xf32> to vector<2x8x1xf32>
    %29 = vector.broadcast %28 : vector<2x8x1xf32> to vector<2x8x8xf32>
    %30 = arith.subf %26, %29 : vector<2x8x8xf32>
    %31 = math.exp %30 : vector<2x8x8xf32>
    %cst_17 = arith.constant dense<0.000000e+00> : vector<2x8xf32>
    %32 = vector.multi_reduction <add>, %31, %cst_17 [2] : vector<2x8x8xf32> to vector<2x8xf32>
    %33 = vector.shape_cast %32 : vector<2x8xf32> to vector<2x8x1xf32>
    %34 = vector.broadcast %33 : vector<2x8x1xf32> to vector<2x8x8xf32>
    %35 = arith.divf %31, %34 : vector<2x8x8xf32>
    "tpu.trace_start"() <{level = 10 : i32, message = "bqk,bkd->bqd"}> : () -> ()
    %cst_18 = arith.constant dense<0.000000e+00> : vector<2x8x8xf32>
    %36 = tpu.matmul %35, %25, %cst_18 {dimension_numbers = #tpu.dot_dimension_numbers<[2], [1], [1], [2], [0, 0, 0, 1, 1, 2], [0], [0]>} : vector<2x8x8xf32>, vector<2x8x8xf32>, vector<2x8x8xf32> -> vector<2x8x8xf32>
    "tpu.trace_stop"() : () -> ()
    %37 = vector.shape_cast %36 : vector<2x8x8xf32> to vector<16x8xf32>
    %38 = vector.extract_strided_slice %21 {offsets = [0, 0], sizes = [8, 32], strides = [1, 1]} : vector<32x32xf32> to vector<8x32xf32>
    %cst_19 = arith.constant dense<0.000000e+00> : vector<16x32xf32>
    %39 = tpu.matmul %37, %38, %cst_19 {dimension_numbers = #tpu.dot_dimension_numbers<[1], [0], [0], [1], [0, 0, 1, 1], [], []>} : vector<16x8xf32>, vector<8x32xf32>, vector<16x32xf32> -> vector<16x32xf32>
    %40 = arith.addf %22, %39 : vector<16x32xf32>
    %41 = vector.extract_strided_slice %19 {offsets = [0, 0, 8], sizes = [2, 8, 8], strides = [1, 1, 1]} : vector<2x8x96xf32> to vector<2x8x8xf32>
    %42 = vector.extract_strided_slice %19 {offsets = [0, 0, 40], sizes = [2, 8, 8], strides = [1, 1, 1]} : vector<2x8x96xf32> to vector<2x8x8xf32>
    %43 = vector.extract_strided_slice %19 {offsets = [0, 0, 72], sizes = [2, 8, 8], strides = [1, 1, 1]} : vector<2x8x96xf32> to vector<2x8x8xf32>
    "tpu.trace_start"() <{level = 10 : i32, message = "bqd,bkd->bqk"}> : () -> ()
    %cst_20 = arith.constant dense<0.000000e+00> : vector<2x8x8xf32>
    %44 = tpu.matmul %41, %42, %cst_20 {dimension_numbers = #tpu.dot_dimension_numbers<[2], [2], [1], [1], [0, 0, 0, 1, 1, 1], [0], [0]>} : vector<2x8x8xf32>, vector<2x8x8xf32>, vector<2x8x8xf32> -> vector<2x8x8xf32>
    "tpu.trace_stop"() : () -> ()
    %cst_21 = arith.constant dense<0xFF800000> : vector<2x8xf32>
    %45 = vector.multi_reduction <maximumf>, %44, %cst_21 [2] : vector<2x8x8xf32> to vector<2x8xf32>
    %46 = vector.shape_cast %45 : vector<2x8xf32> to vector<2x8x1xf32>
    %47 = vector.broadcast %46 : vector<2x8x1xf32> to vector<2x8x8xf32>
    %48 = arith.subf %44, %47 : vector<2x8x8xf32>
    %49 = math.exp %48 : vector<2x8x8xf32>
    %cst_22 = arith.constant dense<0.000000e+00> : vector<2x8xf32>
    %50 = vector.multi_reduction <add>, %49, %cst_22 [2] : vector<2x8x8xf32> to vector<2x8xf32>
    %51 = vector.shape_cast %50 : vector<2x8xf32> to vector<2x8x1xf32>
    %52 = vector.broadcast %51 : vector<2x8x1xf32> to vector<2x8x8xf32>
    %53 = arith.divf %49, %52 : vector<2x8x8xf32>
    "tpu.trace_start"() <{level = 10 : i32, message = "bqk,bkd->bqd"}> : () -> ()
    %cst_23 = arith.constant dense<0.000000e+00> : vector<2x8x8xf32>
    %54 = tpu.matmul %53, %43, %cst_23 {dimension_numbers = #tpu.dot_dimension_numbers<[2], [1], [1], [2], [0, 0, 0, 1, 1, 2], [0], [0]>} : vector<2x8x8xf32>, vector<2x8x8xf32>, vector<2x8x8xf32> -> vector<2x8x8xf32>
    "tpu.trace_stop"() : () -> ()
    %55 = vector.shape_cast %54 : vector<2x8x8xf32> to vector<16x8xf32>
    %56 = vector.extract_strided_slice %21 {offsets = [8, 0], sizes = [8, 32], strides = [1, 1]} : vector<32x32xf32> to vector<8x32xf32>
    %cst_24 = arith.constant dense<0.000000e+00> : vector<16x32xf32>
    %57 = tpu.matmul %55, %56, %cst_24 {dimension_numbers = #tpu.dot_dimension_numbers<[1], [0], [0], [1], [0, 0, 1, 1], [], []>} : vector<16x8xf32>, vector<8x32xf32>, vector<16x32xf32> -> vector<16x32xf32>
    %58 = arith.addf %40, %57 : vector<16x32xf32>
    %59 = vector.extract_strided_slice %19 {offsets = [0, 0, 16], sizes = [2, 8, 8], strides = [1, 1, 1]} : vector<2x8x96xf32> to vector<2x8x8xf32>
    %60 = vector.extract_strided_slice %19 {offsets = [0, 0, 48], sizes = [2, 8, 8], strides = [1, 1, 1]} : vector<2x8x96xf32> to vector<2x8x8xf32>
    %61 = vector.extract_strided_slice %19 {offsets = [0, 0, 80], sizes = [2, 8, 8], strides = [1, 1, 1]} : vector<2x8x96xf32> to vector<2x8x8xf32>
    "tpu.trace_start"() <{level = 10 : i32, message = "bqd,bkd->bqk"}> : () -> ()
    %cst_25 = arith.constant dense<0.000000e+00> : vector<2x8x8xf32>
    %62 = tpu.matmul %59, %60, %cst_25 {dimension_numbers = #tpu.dot_dimension_numbers<[2], [2], [1], [1], [0, 0, 0, 1, 1, 1], [0], [0]>} : vector<2x8x8xf32>, vector<2x8x8xf32>, vector<2x8x8xf32> -> vector<2x8x8xf32>
    "tpu.trace_stop"() : () -> ()
    %cst_26 = arith.constant dense<0xFF800000> : vector<2x8xf32>
    %63 = vector.multi_reduction <maximumf>, %62, %cst_26 [2] : vector<2x8x8xf32> to vector<2x8xf32>
    %64 = vector.shape_cast %63 : vector<2x8xf32> to vector<2x8x1xf32>
    %65 = vector.broadcast %64 : vector<2x8x1xf32> to vector<2x8x8xf32>
    %66 = arith.subf %62, %65 : vector<2x8x8xf32>
    %67 = math.exp %66 : vector<2x8x8xf32>
    %cst_27 = arith.constant dense<0.000000e+00> : vector<2x8xf32>
    %68 = vector.multi_reduction <add>, %67, %cst_27 [2] : vector<2x8x8xf32> to vector<2x8xf32>
    %69 = vector.shape_cast %68 : vector<2x8xf32> to vector<2x8x1xf32>
    %70 = vector.broadcast %69 : vector<2x8x1xf32> to vector<2x8x8xf32>
    %71 = arith.divf %67, %70 : vector<2x8x8xf32>
    "tpu.trace_start"() <{level = 10 : i32, message = "bqk,bkd->bqd"}> : () -> ()
    %cst_28 = arith.constant dense<0.000000e+00> : vector<2x8x8xf32>
    %72 = tpu.matmul %71, %61, %cst_28 {dimension_numbers = #tpu.dot_dimension_numbers<[2], [1], [1], [2], [0, 0, 0, 1, 1, 2], [0], [0]>} : vector<2x8x8xf32>, vector<2x8x8xf32>, vector<2x8x8xf32> -> vector<2x8x8xf32>
    "tpu.trace_stop"() : () -> ()
    %73 = vector.shape_cast %72 : vector<2x8x8xf32> to vector<16x8xf32>
    %74 = vector.extract_strided_slice %21 {offsets = [16, 0], sizes = [8, 32], strides = [1, 1]} : vector<32x32xf32> to vector<8x32xf32>
    %cst_29 = arith.constant dense<0.000000e+00> : vector<16x32xf32>
    %75 = tpu.matmul %73, %74, %cst_29 {dimension_numbers = #tpu.dot_dimension_numbers<[1], [0], [0], [1], [0, 0, 1, 1], [], []>} : vector<16x8xf32>, vector<8x32xf32>, vector<16x32xf32> -> vector<16x32xf32>
    %76 = arith.addf %58, %75 : vector<16x32xf32>
    %77 = vector.extract_strided_slice %19 {offsets = [0, 0, 24], sizes = [2, 8, 8], strides = [1, 1, 1]} : vector<2x8x96xf32> to vector<2x8x8xf32>
    %78 = vector.extract_strided_slice %19 {offsets = [0, 0, 56], sizes = [2, 8, 8], strides = [1, 1, 1]} : vector<2x8x96xf32> to vector<2x8x8xf32>
    %79 = vector.extract_strided_slice %19 {offsets = [0, 0, 88], sizes = [2, 8, 8], strides = [1, 1, 1]} : vector<2x8x96xf32> to vector<2x8x8xf32>
    "tpu.trace_start"() <{level = 10 : i32, message = "bqd,bkd->bqk"}> : () -> ()
    %cst_30 = arith.constant dense<0.000000e+00> : vector<2x8x8xf32>
    %80 = tpu.matmul %77, %78, %cst_30 {dimension_numbers = #tpu.dot_dimension_numbers<[2], [2], [1], [1], [0, 0, 0, 1, 1, 1], [0], [0]>} : vector<2x8x8xf32>, vector<2x8x8xf32>, vector<2x8x8xf32> -> vector<2x8x8xf32>
    "tpu.trace_stop"() : () -> ()
    %cst_31 = arith.constant dense<0xFF800000> : vector<2x8xf32>
    %81 = vector.multi_reduction <maximumf>, %80, %cst_31 [2] : vector<2x8x8xf32> to vector<2x8xf32>
    %82 = vector.shape_cast %81 : vector<2x8xf32> to vector<2x8x1xf32>
    %83 = vector.broadcast %82 : vector<2x8x1xf32> to vector<2x8x8xf32>
    %84 = arith.subf %80, %83 : vector<2x8x8xf32>
    %85 = math.exp %84 : vector<2x8x8xf32>
    %cst_32 = arith.constant dense<0.000000e+00> : vector<2x8xf32>
    %86 = vector.multi_reduction <add>, %85, %cst_32 [2] : vector<2x8x8xf32> to vector<2x8xf32>
    %87 = vector.shape_cast %86 : vector<2x8xf32> to vector<2x8x1xf32>
    %88 = vector.broadcast %87 : vector<2x8x1xf32> to vector<2x8x8xf32>
    %89 = arith.divf %85, %88 : vector<2x8x8xf32>
    "tpu.trace_start"() <{level = 10 : i32, message = "bqk,bkd->bqd"}> : () -> ()
    %cst_33 = arith.constant dense<0.000000e+00> : vector<2x8x8xf32>
    %90 = tpu.matmul %89, %79, %cst_33 {dimension_numbers = #tpu.dot_dimension_numbers<[2], [1], [1], [2], [0, 0, 0, 1, 1, 2], [0], [0]>} : vector<2x8x8xf32>, vector<2x8x8xf32>, vector<2x8x8xf32> -> vector<2x8x8xf32>
    "tpu.trace_stop"() : () -> ()
    %91 = vector.shape_cast %90 : vector<2x8x8xf32> to vector<16x8xf32>
    %92 = vector.extract_strided_slice %21 {offsets = [24, 0], sizes = [8, 32], strides = [1, 1]} : vector<32x32xf32> to vector<8x32xf32>
    %cst_34 = arith.constant dense<0.000000e+00> : vector<16x32xf32>
    %93 = tpu.matmul %91, %92, %cst_34 {dimension_numbers = #tpu.dot_dimension_numbers<[1], [0], [0], [1], [0, 0, 1, 1], [], []>} : vector<16x8xf32>, vector<8x32xf32>, vector<16x32xf32> -> vector<16x32xf32>
    %94 = arith.addf %76, %93 : vector<16x32xf32>
    %95 = vector.broadcast %10 : vector<1x32xf32> to vector<16x32xf32>
    %96 = arith.addf %94, %95 : vector<16x32xf32>
    %97 = arith.addf %3, %96 : vector<16x32xf32>
    %cst_35 = arith.constant dense<0.000000e+00> : vector<16xf32>
    %98 = vector.multi_reduction <add>, %97, %cst_35 [1] : vector<16x32xf32> to vector<16xf32>
    %99 = vector.shape_cast %98 : vector<16xf32> to vector<16x1xf32>
    %cst_36 = arith.constant 3.200000e+01 : f32
    %100 = vector.broadcast %cst_36 : f32 to vector<16x1xf32>
    %101 = arith.divf %99, %100 : vector<16x1xf32>
    %102 = vector.broadcast %101 : vector<16x1xf32> to vector<16x32xf32>
    %103 = arith.subf %97, %102 : vector<16x32xf32>
    %104 = arith.mulf %103, %103 : vector<16x32xf32>
    %cst_37 = arith.constant dense<0.000000e+00> : vector<16xf32>
    %105 = vector.multi_reduction <add>, %104, %cst_37 [1] : vector<16x32xf32> to vector<16xf32>
    %106 = vector.shape_cast %105 : vector<16xf32> to vector<16x1xf32>
    %cst_38 = arith.constant 3.200000e+01 : f32
    %107 = vector.broadcast %cst_38 : f32 to vector<16x1xf32>
    %108 = arith.divf %106, %107 : vector<16x1xf32>
    %109 = vector.broadcast %101 : vector<16x1xf32> to vector<16x32xf32>
    %110 = arith.subf %97, %109 : vector<16x32xf32>
    %cst_39 = arith.constant 9.99999974E-6 : f32
    %111 = vector.broadcast %cst_39 : f32 to vector<16x1xf32>
    %112 = arith.addf %108, %111 : vector<16x1xf32>
    %113 = math.rsqrt %112 : vector<16x1xf32>
    %114 = vector.broadcast %113 : vector<16x1xf32> to vector<16x32xf32>
    %115 = arith.mulf %110, %114 : vector<16x32xf32>
    %116 = vector.broadcast %6 : vector<1x32xf32> to vector<16x32xf32>
    %117 = arith.mulf %115, %116 : vector<16x32xf32>
    %118 = vector.broadcast %7 : vector<1x32xf32> to vector<16x32xf32>
    %119 = arith.addf %117, %118 : vector<16x32xf32>
    %c0_40 = arith.constant 0 : index
    %c0_41 = arith.constant 0 : index
    %c0_42 = arith.constant 0 : index
    %120 = vector.load %arg5[%c0_40, %c0_41, %c0_42] : memref<1x32x64xf32, #tpu.memory_space<vmem>>, vector<1x32x64xf32>
    %121 = vector.shape_cast %120 : vector<1x32x64xf32> to vector<32x64xf32>
    %cst_43 = arith.constant dense<0.000000e+00> : vector<16x64xf32>
    %122 = tpu.matmul %119, %121, %cst_43 {dimension_numbers = #tpu.dot_dimension_numbers<[1], [0], [0], [1], [0, 0, 1, 1], [], []>} : vector<16x32xf32>, vector<32x64xf32>, vector<16x64xf32> -> vector<16x64xf32>
    %c0_44 = arith.constant 0 : index
    %c0_45 = arith.constant 0 : index
    %c0_46 = arith.constant 0 : index
    %123 = vector.load %arg6[%c0_44, %c0_45, %c0_46] : memref<1x1x64xf32, #tpu.memory_space<vmem>>, vector<1x1x64xf32>
    %124 = vector.shape_cast %123 : vector<1x1x64xf32> to vector<1x64xf32>
    %125 = vector.broadcast %124 : vector<1x64xf32> to vector<16x64xf32>
    %126 = arith.addf %122, %125 : vector<16x64xf32>
    %cst_47 = arith.constant 0.000000e+00 : f32
    %127 = vector.broadcast %cst_47 : f32 to vector<16x64xf32>
    %128 = arith.maximumf %126, %127 : vector<16x64xf32>
    %c0_48 = arith.constant 0 : index
    %c0_49 = arith.constant 0 : index
    %c0_50 = arith.constant 0 : index
    %129 = vector.load %arg7[%c0_48, %c0_49, %c0_50] : memref<1x64x32xf32, #tpu.memory_space<vmem>>, vector<1x64x32xf32>
    %130 = vector.shape_cast %129 : vector<1x64x32xf32> to vector<64x32xf32>
    %cst_51 = arith.constant dense<0.000000e+00> : vector<16x32xf32>
    %131 = tpu.matmul %128, %130, %cst_51 {dimension_numbers = #tpu.dot_dimension_numbers<[1], [0], [0], [1], [0, 0, 1, 1], [], []>} : vector<16x64xf32>, vector<64x32xf32>, vector<16x32xf32> -> vector<16x32xf32>
    %132 = vector.broadcast %11 : vector<1x32xf32> to vector<16x32xf32>
    %133 = arith.addf %131, %132 : vector<16x32xf32>
    %134 = arith.addf %119, %133 : vector<16x32xf32>
    %cst_52 = arith.constant dense<0.000000e+00> : vector<16xf32>
    %135 = vector.multi_reduction <add>, %134, %cst_52 [1] : vector<16x32xf32> to vector<16xf32>
    %136 = vector.shape_cast %135 : vector<16xf32> to vector<16x1xf32>
    %cst_53 = arith.constant 3.200000e+01 : f32
    %137 = vector.broadcast %cst_53 : f32 to vector<16x1xf32>
    %138 = arith.divf %136, %137 : vector<16x1xf32>
    %139 = vector.broadcast %138 : vector<16x1xf32> to vector<16x32xf32>
    %140 = arith.subf %134, %139 : vector<16x32xf32>
    %141 = arith.mulf %140, %140 : vector<16x32xf32>
    %cst_54 = arith.constant dense<0.000000e+00> : vector<16xf32>
    %142 = vector.multi_reduction <add>, %141, %cst_54 [1] : vector<16x32xf32> to vector<16xf32>
    %143 = vector.shape_cast %142 : vector<16xf32> to vector<16x1xf32>
    %cst_55 = arith.constant 3.200000e+01 : f32
    %144 = vector.broadcast %cst_55 : f32 to vector<16x1xf32>
    %145 = arith.divf %143, %144 : vector<16x1xf32>
    %146 = vector.broadcast %138 : vector<16x1xf32> to vector<16x32xf32>
    %147 = arith.subf %134, %146 : vector<16x32xf32>
    %cst_56 = arith.constant 9.99999974E-6 : f32
    %148 = vector.broadcast %cst_56 : f32 to vector<16x1xf32>
    %149 = arith.addf %145, %148 : vector<16x1xf32>
    %150 = math.rsqrt %149 : vector<16x1xf32>
    %151 = vector.broadcast %150 : vector<16x1xf32> to vector<16x32xf32>
    %152 = arith.mulf %147, %151 : vector<16x32xf32>
    %153 = vector.broadcast %8 : vector<1x32xf32> to vector<16x32xf32>
    %154 = arith.mulf %152, %153 : vector<16x32xf32>
    %155 = vector.broadcast %9 : vector<1x32xf32> to vector<16x32xf32>
    %156 = arith.addf %154, %155 : vector<16x32xf32>
    %c0_57 = arith.constant 0 : index
    %c0_58 = arith.constant 0 : index
    %157 = vector.load %arg10[%c0_57, %c0_58] : memref<16x32xf32, #tpu.memory_space<vmem>>, vector<16x32xf32>
    tpu.vector_store %arg10[%c0_57, %c0_58], %156 {strides = array<i32>} : memref<16x32xf32, #tpu.memory_space<vmem>>, vector<16x32xf32>,
    %c1_i32 = arith.constant 1 : i32
    %158 = arith.cmpi eq, %arg0, %c1_i32 : i32
    %159 = arith.extui %158 : i1 to i32
    %c0_i32_59 = arith.constant 0 : i32
    %160 = arith.cmpi ne, %159, %c0_i32_59 : i32
    scf.if %160 {
      %c0_60 = arith.constant 0 : index
      %c0_61 = arith.constant 0 : index
      %161 = vector.load %arg9[%c0_60, %c0_61] : memref<2x32xf32, #tpu.memory_space<vmem>>, vector<2x32xf32>
      %162 = vector.extract_strided_slice %161 {offsets = [0, 0], sizes = [1, 32], strides = [1, 1]} : vector<2x32xf32> to vector<1x32xf32>
      %163 = vector.extract_strided_slice %161 {offsets = [1, 0], sizes = [1, 32], strides = [1, 1]} : vector<2x32xf32> to vector<1x32xf32>
      %cst_62 = arith.constant dense<0.000000e+00> : vector<16xf32>
      %164 = vector.multi_reduction <add>, %156, %cst_62 [1] : vector<16x32xf32> to vector<16xf32>
      %165 = vector.shape_cast %164 : vector<16xf32> to vector<16x1xf32>
      %cst_63 = arith.constant 3.200000e+01 : f32
      %166 = vector.broadcast %cst_63 : f32 to vector<16x1xf32>
      %167 = arith.divf %165, %166 : vector<16x1xf32>
      %168 = vector.broadcast %167 : vector<16x1xf32> to vector<16x32xf32>
      %169 = arith.subf %156, %168 : vector<16x32xf32>
      %170 = arith.mulf %169, %169 : vector<16x32xf32>
      %cst_64 = arith.constant dense<0.000000e+00> : vector<16xf32>
      %171 = vector.multi_reduction <add>, %170, %cst_64 [1] : vector<16x32xf32> to vector<16xf32>
      %172 = vector.shape_cast %171 : vector<16xf32> to vector<16x1xf32>
      %cst_65 = arith.constant 3.200000e+01 : f32
      %173 = vector.broadcast %cst_65 : f32 to vector<16x1xf32>
      %174 = arith.divf %172, %173 : vector<16x1xf32>
      %175 = vector.broadcast %167 : vector<16x1xf32> to vector<16x32xf32>
      %176 = arith.subf %156, %175 : vector<16x32xf32>
      %cst_66 = arith.constant 9.99999974E-6 : f32
      %177 = vector.broadcast %cst_66 : f32 to vector<16x1xf32>
      %178 = arith.addf %174, %177 : vector<16x1xf32>
      %179 = math.rsqrt %178 : vector<16x1xf32>
      %180 = vector.broadcast %179 : vector<16x1xf32> to vector<16x32xf32>
      %181 = arith.mulf %176, %180 : vector<16x32xf32>
      %182 = vector.broadcast %162 : vector<1x32xf32> to vector<16x32xf32>
      %183 = arith.mulf %181, %182 : vector<16x32xf32>
      %184 = vector.broadcast %163 : vector<1x32xf32> to vector<16x32xf32>
      %185 = arith.addf %183, %184 : vector<16x32xf32>
      %c0_67 = arith.constant 0 : index
      %c0_68 = arith.constant 0 : index
      %186 = vector.load %arg10[%c0_67, %c0_68] : memref<16x32xf32, #tpu.memory_space<vmem>>, vector<16x32xf32>
      tpu.vector_store %arg10[%c0_67, %c0_68], %185 {strides = array<i32>} : memref<16x32xf32, #tpu.memory_space<vmem>>, vector<16x32xf32>,
    } else {
    }
    return
  }
  func.func @transform_0(%arg0: i32) -> (i32, i32) {
    %c0_i32 = arith.constant 0 : i32
    %c0_i32_0 = arith.constant 0 : i32
    %c0_i32_1 = arith.constant 0 : i32
    return %c0_i32, %c0_i32_0 : i32, i32
  }
  func.func @transform_1(%arg0: i32) -> (i32, i32, i32) {
    %c0_i32 = arith.constant 0 : i32
    %c0_i32_0 = arith.constant 0 : i32
    %c0_i32_1 = arith.constant 0 : i32
    return %arg0, %c0_i32, %c0_i32_0 : i32, i32, i32
  }
  func.func @transform_2(%arg0: i32) -> (i32, i32, i32) {
    %c0_i32 = arith.constant 0 : i32
    %c0_i32_0 = arith.constant 0 : i32
    %c0_i32_1 = arith.constant 0 : i32
    return %arg0, %c0_i32, %c0_i32_0 : i32, i32, i32
  }
  func.func @transform_3(%arg0: i32) -> (i32, i32, i32) {
    %c0_i32 = arith.constant 0 : i32
    %c0_i32_0 = arith.constant 0 : i32
    %c0_i32_1 = arith.constant 0 : i32
    return %arg0, %c0_i32, %c0_i32_0 : i32, i32, i32
  }
  func.func @transform_4(%arg0: i32) -> (i32, i32, i32) {
    %c0_i32 = arith.constant 0 : i32
    %c0_i32_0 = arith.constant 0 : i32
    %c0_i32_1 = arith.constant 0 : i32
    return %arg0, %c0_i32, %c0_i32_0 : i32, i32, i32
  }
  func.func @transform_5(%arg0: i32) -> (i32, i32, i32) {
    %c0_i32 = arith.constant 0 : i32
    %c0_i32_0 = arith.constant 0 : i32
    %c0_i32_1 = arith.constant 0 : i32
    return %arg0, %c0_i32, %c0_i32_0 : i32, i32, i32
  }
  func.func @transform_6(%arg0: i32) -> (i32, i32, i32) {
    %c0_i32 = arith.constant 0 : i32
    %c0_i32_0 = arith.constant 0 : i32
    %c0_i32_1 = arith.constant 0 : i32
    return %arg0, %c0_i32, %c0_i32_0 : i32, i32, i32
  }
  func.func @transform_7(%arg0: i32) -> (i32, i32, i32) {
    %c0_i32 = arith.constant 0 : i32
    %c0_i32_0 = arith.constant 0 : i32
    %c0_i32_1 = arith.constant 0 : i32
    return %arg0, %c0_i32, %c0_i32_0 : i32, i32, i32
  }
  func.func @transform_8(%arg0: i32) -> (i32, i32) {
    %c0_i32 = arith.constant 0 : i32
    %c0_i32_0 = arith.constant 0 : i32
    %c0_i32_1 = arith.constant 0 : i32
    return %c0_i32, %c0_i32_0 : i32, i32
  }
  func.func @transform_9(%arg0: i32) -> (i32, i32) {
    %c0_i32 = arith.constant 0 : i32
    %c0_i32_0 = arith.constant 0 : i32
    %c0_i32_1 = arith.constant 0 : i32
    return %c0_i32, %c0_i32_0 : i32, i32
  }
}

</mosaic_0001>

<bundles_post_ra>
// kernel: tpu_custom_call.1
= control target key start
LH: loop header
LB: loop body
LE: loop exit
PB: predicated region body
PF: predicated region fallthrough
CT: control target
= control target key end

     0   :  { %14 = vsyncpa [#allocation3], 0  ;;  %s3102_s30 = smov 0   ;;  %s3400_s0 = inlined_call_operand.vmem [shape: f32[16,32], index: 0, kind: input, shape index: {}]   ;;  %s3401_s1 = inlined_call_operand.vmem [shape: f32[2,32,96], index: 1, kind: input, shape index: {}]   ;;  %s3402_s2 = inlined_call_operand.vmem [shape: f32[2,1,96], index: 2, kind: input, shape index: {}]   ;;  %s3403_s3 = inlined_call_operand.vmem [shape: f32[2,32,32], index: 3, kind: input, shape index: {}]   ;;  %s3404_s4 = inlined_call_operand.vmem [shape: f32[2,32,64], index: 4, kind: input, shape index: {}]   ;;  %s3405_s5 = inlined_call_operand.vmem [shape: f32[2,1,64], index: 5, kind: input, shape index: {}]   ;;  %s3406_s6 = inlined_call_operand.vmem [shape: f32[2,64,32], index: 6, kind: input, shape index: {}]   ;;  %s3407_s7 = inlined_call_operand.vmem [shape: f32[2,6,32], index: 7, kind: input, shape index: {}]   ;;  %s3408_s8 = inlined_call_operand.vmem [shape: f32[2,32], index: 8, kind: input, shape index: {}]   ;;  %s3409_s9 = inlined_call_operand.hbm [shape: f32[16,32], index: 9, kind: output, shape index: {}]  }
   0x1 LB: > { %s3108_s10 = sadd.s32 4294967295, %s3034_s30   ;;  %p2619_p0 = scmp.ge.s32.totalorder %s3034_s30, 1  ;;  %s3034_s30 = sphi %s3102_s30, %s20_s30  }
   0x2   : > { %p338_p1 = scmp.lt.s32.totalorder %s3034_s30, 3 }
   0x4   : > { %p339_p2 = pnand %p2619_p0, %p338_p1 }
   0x5   : > { %p394_p3 = scmp.lt.s32.totalorder (!%p339_p2), %s3108_s10, 1  ;;  %p2629_p4 = scmp.ne.s32.totalorder (!%p339_p2), %s3108_s10, 0 }
   0x6   : > { %342 = sbr.rel (%p339_p2) target bundleno = 4536 (0x11b8), region = 56 }
   0xd   : > { %s3114_s11 = scalar_select %p394_p3, %s3108_s10, 1 }
   0xe   : > { %427 = sbr.rel (%p2629_p4) target bundleno = 21 (0x15), region = 60  ;;  %v428_v0 = vld [vmem:[%s3400_s0] sm:$0xff] (!%p2629_p4)  ;;  %vm430_vm0 = vcmask (!%p2629_p4), 261120   ;;  %v429_v1 = vld [vmem:[%s3400_s0 + $0x8] sm:$0xff] (!%p2629_p4) }
   0xf   : > { %s2675_s12 = sshll.u32 %s3114_s11, 5  ;;  %s401_s15 = scalar_lea.vmem %s3402_s2, %s3114_s11  ;;  %431 = vst.msk [vmem:[#allocation2] sm:$0xff] (!%p2629_p4), %vm430_vm0, %v428_v0  ;;  %432 = vst.msk [vmem:[#allocation2 + $0x8] sm:$0xff] (!%p2629_p4), %vm430_vm0, %v429_v1 }
  0x10   : > { %s398_s18 = scalar_lea.vmem %s3401_s1, %s2675_s12  ;;  %s3127_s21 = scalar_lea.vmem %s3403_s3, %s2675_s12 }
  0x11   : > { %s3132_s24 = scalar_lea.vmem %s3404_s4, %s2675_s12  ;;  %s414_s27 = scalar_lea.vmem %s3405_s5, %s3114_s11 }
  0x12   : > { %s2678_s28 = sshll.u32 %s3114_s11, 6  ;;  %s2628_s29 = sshll.u32 %s3114_s11, 3 }
  0x13   : > { %s3143_s16 = scalar_lea.vmem %s3406_s6, %s2678_s28  ;;  %s3148_s20 = scalar_lea.vmem %s3407_s7, %s2628_s29 }
  0x15 PF: > { %v436_v2 = vld [vmem:[%s398_s18] sm:$0xff]  ;;  %v437_v3 = vld [vmem:[%s398_s18 + $0x8] sm:$0xff]  ;;  %v438_v4 = vld [vmem:[%s398_s18 + $0x10] sm:$0xff]  ;;  %vm447_vm1 = vcmask 261120   ;;  %v3036_v10 = vmov 0.0   ;;  %vm3037_vm2 = vmmov 0  }
  0x16   : > { %v2886_v5 = vpack.c.bf16 %v437_v3, %v436_v2  ;;  %v439_v6 = vld [vmem:[%s398_s18 + $0x18] sm:$0xff]  ;;  %v3157_v7 = vld [vmem:[#allocation2] sm:$0xff]  ;;  %v3161_v9 = vld [vmem:[#allocation2 + $0x8] sm:$0xff]  ;;  %2766 = vmatprep.subr.mxu0 %v3036_v10  ;;  %2768 = vmatprep.mubr.msk.f32.mxu0 %vm3037_vm2, %v3036_v10  ;;  %s3038_s28 = smov 96   ;;  %s3039_s29 = smov 64   ;;  %vm536_vm3 = vcmask 64512  }
  0x17   : > { %v2890_v8 = vpack.c.bf16 %v439_v6, %v438_v4  ;;  %2753 = vmatprep.mubr.msk.f32.mxu1 %vm447_vm1, %v3157_v7  ;;  %v2630_v11 = vld [vmem:[%s401_s15] ss:$0 sm:$0xff]  ;;  %s3040_s13 = smov 120   ;;  %s3041_s15 = smov 88   ;;  %vm2333_vm4 = vcmask 523264  }
  0x18   : > { %2887 = vmatprep.subr.bf16.mxu1 %v2886_v5  ;;  %s3042_s14 = smov 80   ;;  %s3043_s17 = smov 56  }
  0x19   : > { %2889 = vmatpush3.bf16.msra.mxu1 %v2886_v5  ;;  %s3044_s19 = smov 112   ;;  %s3045_s12 = smov 48  }
  0x1a   : > { %2891 = vmatprep.subr.bf16.mxu1 %v2890_v8  ;;  %s3046_s22 = smov 72   ;;  %s3047_s23 = smov 104  }
  0x1b   : > { %s3048_s25 = smov 40   ;;  %p2670_p5 = scmp.ne.s32.totalorder %s3108_s10, 1 }
  0x1d   : > { %2893 = vmatpush3.bf16.msra.mxu1 %v2890_v8 }
  0x1e   : > { %2756 = vmatprep.subr.mxu1 %v3036_v10 }
  0x20   : > { %2754 = vmatmul.mubr.msk.f32.vlgmr.msra.gmra.mrb[0].mxu1 %vm447_vm1, %v3161_v9 }
  0x21   : > { %2758 = vmatprep.mubr.msk.f32.mxu1 %vm3037_vm2, %v3036_v10 }
  0xf3   : > { %v2755_v12 = vpop.f32.mrb[0].mxu1 }
  0xf4   : > { %v520_v13 = vpop.f32.mrb[1].mxu1  ;;  %v3179_v15 = vadd.f32 %v2755_v12, %v2630_v11 }
  0xf5   : > { %v3176_v14 = vadd.f32 %v2630_v11, %v520_v13 }
  0xf7   : > { %534 = vrot.lane.b32.xlu0 %v3176_v14, %s3038_s28 }
  0xfb   : > { %612 = vrot.lane.b32.xlu0 %v3179_v15, %s3038_s28 }
  0xff   : > { %786 = vrot.lane.b32.xlu0 %v3179_v15, %s3039_s29 }
 0x103   : > { %940 = vrot.lane.b32.xlu0 %v3179_v15, %s3040_s13 }
 0x169   : > { %v535_v16 = vpop.permute.xlu0 %534 }
 0x16a   : > { %2757 = vmatpush3.xpose.msk.msra.mxu1 %vm536_vm3, %v535_v16 }
 0x16b   : > { %2761 = vmatprep.subr.mxu1 %v3036_v10 }
 0x16d   : > { %2759 = vmatmul.mubr.msk.f32.vlgmr.msra.gmra.mrb[2].mxu1 %vm536_vm3, %v3176_v14  ;;  %v613_v17 = vpop.permute.xlu0 %612 }
 0x16e   : > { %2762 = vmatpush3.xpose.msk.msra.mxu1 %vm536_vm3, %v613_v17  ;;  %2763 = vmatprep.mubr.msk.f32.mxu1 %vm3037_vm2, %v3036_v10 }
 0x16f   : > { %2771 = vmatprep.subr.mxu1 %v3036_v10 }
 0x171   : > { %2764 = vmatmul.mubr.msk.f32.vlgmr.msra.gmra.mrb[4].mxu1 %vm536_vm3, %v3179_v15  ;;  %v787_v18 = vpop.permute.xlu0 %786 }
 0x172   : > { %2772 = vmatpush3.msra.mxu1 %v787_v18  ;;  %2773 = vmatprep.mubr.msk.f32.mxu1 %vm3037_vm2, %v3036_v10 }
 0x173   : > { %2781 = vmatprep.subr.mxu1 %v3036_v10 }
 0x175   : > { %v941_v25 = vpop.permute.xlu0 %940 }
 0x240   : > { %v607_v19 = vpop.f32.mrb[2].mxu1 }
 0x241   : > { %v2760_v20 = vpop.f32.mrb[3].mxu1  ;;  %v688_v21 = vsel %vm536_vm3, %v607_v19, -inf }
 0x242   : > { %689 = vmax.xlane.f32.xlu0 %v688_v21  ;;  %v529_v20 = vld [vmem:[%s3127_s21] sm:$0xff] }
 0x244   : > { %v684_v22 = vpop.f32.mrb[4].mxu1 }
 0x245   : > { %v2765_v23 = vpop.f32.mrb[5].mxu1  ;;  %v691_v24 = vsel %vm536_vm3, %v684_v22, -inf }
 0x246   : > { %692 = vmax.xlane.f32.xlu1 %v691_v24 }
 0x258   : > { %710 = vrot.lane.b32.xlu0 %v3176_v14, %s3039_s29 }
 0x25c   : > { %862 = vrot.lane.b32.xlu0 %v3176_v14, %s3040_s13 }
 0x2cf   : > { %v690_v26 = vpop.xlane.xlu0 %689 }
 0x2d0   : > { %v694_v33 = vsub.f32 %v607_v19, %v690_v26  ;;  %v530_v19 = vld [vmem:[%s3127_s21 + $0x8] sm:$0xff] }
 0x2d2   : > { %v696_v34 = vmul.f32 1.442695, %v694_v33 }
 0x2d3   : > { %v693_v27 = vpop.xlane.xlu1 %692  ;;  %v711_v28 = vpop.permute.xlu0 %710 }
 0x2d4   : > { %v695_v29 = vsub.f32 %v684_v22, %v693_v27  ;;  %2767 = vmatpush3.msra.mxu0 %v711_v28 }
 0x2d5   : > { %2776 = vmatprep.subr.mxu0 %v3036_v10 }
 0x2d6   : > { %v698_v30 = vmul.f32 1.442695, %v695_v29 }
 0x2d7   : > { %v863_v45 = vpop.permute.xlu0 %862 }
 0x2d8   : > { %2954 = vpow2.f32 %v698_v30 }
 0x2d9   : > { %2956 = vpow2.f32 %v696_v34 }
 0x2e2   : > { %v2955_v31 = vpop.eup %2954 }
 0x2e3   : > { %v703_v32 = vsel %vm536_vm3, %v2955_v31, 0.0  ;;  %v2957_v35 = vpop.eup %2956 }
 0x2e4   : > { %704 = vadd.xlane.f32.xlu1 %v703_v32  ;;  %v700_v36 = vsel %vm536_vm3, %v2957_v35, 0.0 }
 0x2f5   : > { %942 = vrot.lane.b32.xlu1 %v3179_v15, %s3041_s15 }
 0x319   : > { %701 = vadd.xlane.f32.xlu1 %v700_v36 }
 0x32a   : > { %864 = vrot.lane.b32.xlu1 %v3176_v14, %s3041_s15 }
 0x32e   : > { %1356 = vrot.lane.b32.xlu1 %v3176_v14, %s3042_s14 }
 0x371   : > { %v705_v37 = vpop.xlane.xlu1 %704 }
 0x372   : > { %2958 = vrcp.f32 %v705_v37 }
 0x375   : > { %v943_v40 = vpop.permute.xlu1 %942 }
 0x37c   : > { %v2959_v38 = vpop.eup %2958 }
 0x37d   : > { %v709_v39 = vmul.f32 %v2959_v38, %v2955_v31 }
 0x37f   : > { %2774 = vmatmul.mubr.msk.f32.vlgmr.msra.gmra.mrb[6].mxu1 %vm536_vm3, %v709_v39 }
 0x380   : > { %2782 = vmatpush3.xpose.msk.msra.mxu1 %vm536_vm3, %v943_v40  ;;  %2783 = vmatprep.mubr.msk.f32.mxu1 %vm3037_vm2, %v3036_v10 }
 0x381   : > { %2791 = vmatprep.subr.mxu1 %v3036_v10 }
 0x383   : > { %2784 = vmatmul.mubr.msk.f32.vlgmr.msra.gmra.mrb[8].mxu1 %vm536_vm3, %v941_v25 }
 0x384   : > { %2793 = vmatprep.mubr.msk.f32.mxu1 %vm3037_vm2, %v3036_v10 }
 0x3a6   : > { %v702_v41 = vpop.xlane.xlu1 %701 }
 0x3a7   : > { %2960 = vrcp.f32 %v702_v41 }
 0x3aa   : > { %v865_v44 = vpop.permute.xlu1 %864 }
 0x3ae   : > { %v1357_v6 = vpop.permute.xlu1 %1356 }
 0x3b1   : > { %v2961_v42 = vpop.eup %2960 }
 0x3b2   : > { %v707_v43 = vmul.f32 %v2961_v42, %v2957_v35  ;;  %v531_v42 = vld [vmem:[%s3127_s21 + $0x10] sm:$0xff] }
 0x3b4   : > { %2769 = vmatmul.mubr.msk.f32.vlgmr.msra.gmra.mrb[0].mxu0 %vm536_vm3, %v707_v43 }
 0x3b5   : > { %2777 = vmatpush3.xpose.msk.msra.mxu0 %vm536_vm3, %v865_v44  ;;  %2778 = vmatprep.mubr.msk.f32.mxu0 %vm3037_vm2, %v3036_v10 }
 0x3b6   : > { %2786 = vmatprep.subr.mxu0 %v3036_v10 }
 0x3b8   : > { %2779 = vmatmul.mubr.msk.f32.vlgmr.msra.gmra.mrb[2].mxu0 %vm536_vm3, %v863_v45 }
 0x3b9   : > { %2788 = vmatprep.mubr.msk.f32.mxu0 %vm3037_vm2, %v3036_v10 }
 0x452   : > { %v3224_v46 = vpop.f32.mrb[6].mxu1 }
 0x453   : > { %v2775_v47 = vpop.f32.mrb[7].mxu1 }
 0x456   : > { %v1014_v48 = vpop.f32.mrb[8].mxu1 }
 0x457   : > { %v2785_v49 = vpop.f32.mrb[9].mxu1  ;;  %v1021_v50 = vsel %vm536_vm3, %v1014_v48, -inf }
 0x458   : > { %1022 = vmax.xlane.f32.xlu0 %v1021_v50 }
 0x46e   : > { %1116 = vrot.lane.b32.xlu0 %v3179_v15, %s3043_s17 }
 0x472   : > { %1354 = vrot.lane.b32.xlu0 %v3176_v14, %s3044_s19 }
 0x476   : > { %1434 = vrot.lane.b32.xlu0 %v3179_v15, %s3042_s14 }
 0x487   : > { %v3231_v51 = vpop.f32.mrb[0].mxu0 }
 0x488   : > { %v2770_v52 = vpop.f32.mrb[1].mxu0 }
 0x48b   : > { %v936_v53 = vpop.f32.mrb[2].mxu0 }
 0x48c   : > { %v2780_v54 = vpop.f32.mrb[3].mxu0  ;;  %v1018_v55 = vsel %vm536_vm3, %v936_v53, -inf }
 0x495   : > { %1019 = vmax.xlane.f32.xlu0 %v1018_v55 }
 0x4ab   : > { %1040 = vrot.lane.b32.xlu0 %v3176_v14, %s3043_s17 }
 0x4af   : > { %1532 = vrot.lane.b32.xlu0 %v3176_v14, %s3045_s12 }
 0x4b3   : > { %1769 = vrot.lane.b32.xlu0 %v3176_v14, %s3046_s22 }
 0x4b7   : > { %1847 = vrot.lane.b32.xlu0 %v3179_v15, %s3046_s22 }
 0x4bb   : > { %1767 = vrot.lane.b32.xlu0 %v3176_v14, %s3047_s23 }
 0x4bf   : > { %1845 = vrot.lane.b32.xlu0 %v3179_v15, %s3047_s23 }
 0x4e5   : > { %v1023_v56 = vpop.xlane.xlu0 %1022 }
 0x4e6   : > { %v1025_v57 = vsub.f32 %v1014_v48, %v1023_v56 }
 0x4e8   : > { %v1028_v58 = vmul.f32 1.442695, %v1025_v57 }
 0x4e9   : > { %v1117_v59 = vpop.permute.xlu0 %1116 }
 0x4ea   : > { %2962 = vpow2.f32 %v1028_v58  ;;  %2792 = vmatpush3.msra.mxu1 %v1117_v59 }
 0x4eb   : > { %2806 = vmatprep.subr.mxu1 %v3036_v10 }
 0x4ed   : > { %v1355_v62 = vpop.permute.xlu0 %1354 }
 0x4f1   : > { %v1435_v63 = vpop.permute.xlu0 %1434 }
 0x4f4   : > { %v2963_v60 = vpop.eup %2962 }
 0x4f5   : > { %v1033_v61 = vsel %vm536_vm3, %v2963_v60, 0.0 }
 0x4f6   : > { %1034 = vadd.xlane.f32.xlu1 %v1033_v61 }
 0x507   : > { %1432 = vrot.lane.b32.xlu1 %v3179_v15, %s3044_s19 }
 0x522   : > { %v1020_v0 = vpop.xlane.xlu0 %1019 }
 0x523   : > { %v1024_v1 = vsub.f32 %v936_v53, %v1020_v0 }
 0x525   : > { %v1026_v2 = vmul.f32 1.442695, %v1024_v1 }
 0x526   : > { %v1041_v3 = vpop.permute.xlu0 %1040 }
 0x527   : > { %2964 = vpow2.f32 %v1026_v2  ;;  %2787 = vmatpush3.msra.mxu0 %v1041_v3 }
 0x528   : > { %2796 = vmatprep.subr.mxu0 %v530_v19 }
 0x52a   : > { %v1533_v31 = vpop.permute.xlu0 %1532 }
 0x531   : > { %v2965_v4 = vpop.eup %2964 }
 0x532   : > { %v1030_v5 = vsel %vm536_vm3, %v2965_v4, 0.0 }
 0x533   : > { %1031 = vadd.xlane.f32.xlu1 %v1030_v5 }
 0x583   : > { %v1035_v8 = vpop.xlane.xlu1 %1034 }
 0x584   : > { %2966 = vrcp.f32 %v1035_v8 }
 0x587   : > { %v1433_v13 = vpop.permute.xlu1 %1432 }
 0x58e   : > { %v2967_v11 = vpop.eup %2966 }
 0x58f   : > { %v1039_v12 = vmul.f32 %v2967_v11, %v2963_v60 }
 0x591   : > { %2794 = vmatmul.mubr.msk.f32.vlgmr.msra.gmra.mrb[10].mxu1 %vm536_vm3, %v1039_v12 }
 0x592   : > { %2807 = vmatpush3.xpose.msk.msra.mxu1 %vm536_vm3, %v1357_v6  ;;  %2808 = vmatprep.mubr.msk.f32.mxu1 %vm3037_vm2, %v3036_v10 }
 0x593   : > { %2811 = vmatprep.subr.mxu1 %v3036_v10 }
 0x595   : > { %2809 = vmatmul.mubr.msk.f32.vlgmr.msra.gmra.mrb[12].mxu1 %vm536_vm3, %v1355_v62 }
 0x596   : > { %2812 = vmatpush3.xpose.msk.msra.mxu1 %vm536_vm3, %v1435_v63  ;;  %2813 = vmatprep.mubr.msk.f32.mxu1 %vm3037_vm2, %v3036_v10 }
 0x597   : > { %2821 = vmatprep.subr.mxu1 %v3036_v10 }
 0x599   : > { %2814 = vmatmul.mubr.msk.f32.vlgmr.msra.gmra.mrb[14].mxu1 %vm536_vm3, %v1433_v13 }
 0x59a   : > { %2823 = vmatprep.mubr.msk.f32.mxu1 %vm3037_vm2, %v3036_v10 }
 0x5c0   : > { %v1032_v16 = vpop.xlane.xlu1 %1031 }
 0x5c1   : > { %2968 = vrcp.f32 %v1032_v16 }
 0x5cb   : > { %v2969_v17 = vpop.eup %2968 }
 0x5cc   : > { %v1037_v18 = vmul.f32 %v2969_v17, %v2965_v4 }
 0x5ce   : > { %2789 = vmatmul.mubr.msk.f32.vlgmr.msra.gmra.mrb[4].mxu0 %vm536_vm3, %v1037_v18  ;;  %v532_v18 = vld [vmem:[%s3127_s21 + $0x18] sm:$0xff] }
 0x5cf   : > { %2797 = vmatpush3.msra.mxu0 %v530_v19 }
 0x5d0   : > { %2801 = vmatprep.subr.mxu0 %v529_v20 }
 0x664   : > { %v1188_v21 = vpop.f32.mrb[10].mxu1 }
 0x665   : > { %v2795_v22 = vpop.f32.mrb[11].mxu1 }
 0x668   : > { %v1428_v23 = vpop.f32.mrb[12].mxu1 }
 0x669   : > { %v2810_v24 = vpop.f32.mrb[13].mxu1  ;;  %v1510_v25 = vsel %vm536_vm3, %v1428_v23, -inf }
 0x66a   : > { %1511 = vmax.xlane.f32.xlu1 %v1510_v25 }
 0x66c   : > { %v1506_v26 = vpop.f32.mrb[14].mxu1 }
 0x66d   : > { %v2815_v27 = vpop.f32.mrb[15].mxu1  ;;  %v1513_v28 = vsel %vm536_vm3, %v1506_v26, -inf }
 0x66e   : > { %1514 = vmax.xlane.f32.xlu1 %v1513_v28  ;;  %v3312_v28 = vld [vmem:[%s3148_s20] sm:$0x3f] }
 0x6a1   : > { %v1112_v29 = vpop.f32.mrb[4].mxu0 }
 0x6a2   : > { %v2790_v30 = vpop.f32.mrb[5].mxu0  ;;  %2798 = vmatprep.mubr.msk.f32.mxu0 %vm536_vm3, %v1112_v29 }
 0x6a3   : > { %2799 = vmatmul.mubr.msk.f32.vlgmr.msra.gmra.mrb[6].mxu0 %vm536_vm3, %v1188_v21 }
 0x6a4   : > { %2803 = vmatprep.mubr.msk.f32.mxu0 %vm536_vm3, %v3231_v51  ;;  %2802 = vmatpush3.msra.mxu0 %v529_v20 }
 0x6a5   : > { %2816 = vmatprep.subr.mxu0 %v3036_v10 }
 0x6ab   : > { %2804 = vmatmul.mubr.msk.f32.vlgmr.msra.gmra.mrb[6].mxu0 %vm536_vm3, %v3224_v46  ;;  %v1770_v46 = vpop.permute.xlu0 %1769 }
 0x6ac   : > { %2817 = vmatpush3.msra.mxu0 %v1533_v31  ;;  %2818 = vmatprep.mubr.msk.f32.mxu0 %vm3037_vm2, %v3036_v10 }
 0x6ad   : > { %2826 = vmatprep.subr.mxu0 %v531_v42 }
 0x6af   : > { %v1848_v50 = vpop.permute.xlu0 %1847 }
 0x6b3   : > { %v1768_v52 = vpop.permute.xlu0 %1767 }
 0x6b7   : > { %v1846_v57 = vpop.permute.xlu0 %1845 }
 0x6f7   : > { %v1512_v32 = vpop.xlane.xlu1 %1511 }
 0x6f8   : > { %v1516_v33 = vsub.f32 %v1428_v23, %v1512_v32 }
 0x6fa   : > { %v1518_v34 = vmul.f32 1.442695, %v1516_v33 }
 0x6fb   : > { %v1515_v35 = vpop.xlane.xlu1 %1514 }
 0x6fc   : > { %2970 = vpow2.f32 %v1518_v34  ;;  %v1517_v36 = vsub.f32 %v1506_v26, %v1515_v35 }
 0x6fe   : > { %v1520_v37 = vmul.f32 1.442695, %v1517_v36 }
 0x700   : > { %2972 = vpow2.f32 %v1520_v37 }
 0x706   : > { %v2971_v38 = vpop.eup %2970 }
 0x707   : > { %v1522_v39 = vsel %vm536_vm3, %v2971_v38, 0.0 }
 0x708   : > { %1523 = vadd.xlane.f32.xlu1 %v1522_v39 }
 0x70a   : > { %v2973_v40 = vpop.eup %2972 }
 0x70b   : > { %v1525_v41 = vsel %vm536_vm3, %v2973_v40, 0.0 }
 0x70c   : > { %1526 = vadd.xlane.f32.xlu1 %v1525_v41 }
 0x71d   : > { %1608 = vrot.lane.b32.xlu1 %v3179_v15, %s3045_s12 }
 0x795   : > { %v1524_v43 = vpop.xlane.xlu1 %1523 }
 0x796   : > { %2974 = vrcp.f32 %v1524_v43 }
 0x799   : > { %v1527_v44 = vpop.xlane.xlu1 %1526 }
 0x79a   : > { %2976 = vrcp.f32 %v1527_v44 }
 0x79d   : > { %v1609_v45 = vpop.permute.xlu1 %1608 }
 0x79e   : > { %2822 = vmatpush3.msra.mxu1 %v1609_v45 }
 0x79f   : > { %2831 = vmatprep.subr.mxu1 %v3036_v10 }
 0x7a0   : > { %v2975_v47 = vpop.eup %2974 }
 0x7a1   : > { %v1529_v48 = vmul.f32 %v2975_v47, %v2971_v38  ;;  %v2228_v47 = vld [vmem:[%s3132_s24 + $0x8] sm:$0xff] }
 0x7a3   : > { %2819 = vmatmul.mubr.msk.f32.vlgmr.msra.gmra.mrb[8].mxu0 %vm536_vm3, %v1529_v48 }
 0x7a4   : > { %v2977_v49 = vpop.eup %2976  ;;  %2827 = vmatpush3.msra.mxu0 %v531_v42 }
 0x7a5   : > { %v1531_v51 = vmul.f32 %v2977_v49, %v2973_v40  ;;  %2836 = vmatprep.subr.mxu0 %v3036_v10  ;;  %v2229_v49 = vld [vmem:[%s3132_s24 + $0x10] sm:$0xff] }
 0x7a7   : > { %2824 = vmatmul.mubr.msk.f32.vlgmr.msra.gmra.mrb[16].mxu1 %vm536_vm3, %v1531_v51 }
 0x7a8   : > { %2832 = vmatpush3.xpose.msk.msra.mxu1 %vm536_vm3, %v1770_v46  ;;  %2833 = vmatprep.mubr.msk.f32.mxu1 %vm3037_vm2, %v3036_v10  ;;  %v2227_v46 = vld [vmem:[%s3132_s24] sm:$0xff] }
 0x7a9   : > { %2841 = vmatprep.subr.mxu1 %v3036_v10  ;;  %v2894_v48 = vpack.c.bf16 %v2228_v47, %v2227_v46 }
 0x7ab   : > { %2834 = vmatmul.mubr.msk.f32.vlgmr.msra.gmra.mrb[18].mxu1 %vm536_vm3, %v1768_v52  ;;  %v2321_v52 = vld [vmem:[%s3143_s16] sm:$0xff] }
 0x7ac   : > { %2843 = vmatprep.mubr.msk.f32.mxu1 %vm3037_vm2, %v3036_v10 }
 0x876   : > { %v1604_v53 = vpop.f32.mrb[8].mxu0 }
 0x877   : > { %v2820_v54 = vpop.f32.mrb[9].mxu0  ;;  %2828 = vmatprep.mubr.msk.f32.mxu0 %vm536_vm3, %v1604_v53  ;;  %v2322_v53 = vld [vmem:[%s3143_s16 + $0x8] sm:$0xff] }
 0x878   : > { %v2323_v54 = vld [vmem:[%s3143_s16 + $0x10] sm:$0xff] }
 0x87a   : > { %v1680_v55 = vpop.f32.mrb[16].mxu1 }
 0x87b   : > { %v2825_v56 = vpop.f32.mrb[17].mxu1  ;;  %2829 = vmatmul.mubr.msk.f32.vlgmr.msra.gmra.mrb[6].mxu0 %vm536_vm3, %v1680_v55  ;;  %v2902_v55 = vpack.c.bf16 %v2322_v53, %v2321_v52 }
 0x87c   : > { %2837 = vmatpush3.xpose.msk.msra.mxu0 %vm536_vm3, %v1848_v50  ;;  %2838 = vmatprep.mubr.msk.f32.mxu0 %vm3037_vm2, %v3036_v10  ;;  %v2230_v50 = vld [vmem:[%s3132_s24 + $0x18] sm:$0xff] }
 0x87d   : > { %2846 = vmatprep.subr.mxu0 %v3036_v10  ;;  %v2898_v51 = vpack.c.bf16 %v2230_v50, %v2229_v49  ;;  %v2324_v56 = vld [vmem:[%s3143_s16 + $0x18] sm:$0xff] }
 0x87e   : > { %v1841_v58 = vpop.f32.mrb[18].mxu1 }
 0x87f   : > { %v2835_v59 = vpop.f32.mrb[19].mxu1  ;;  %2839 = vmatmul.mubr.msk.f32.vlgmr.msra.gmra.mrb[10].mxu0 %vm536_vm3, %v1846_v57  ;;  %v1923_v60 = vsel %vm536_vm3, %v1841_v58, -inf  ;;  %v2906_v57 = vpack.c.bf16 %v2324_v56, %v2323_v54 }
 0x880   : > { %1924 = vmax.xlane.f32.xlu1 %v1923_v60  ;;  %2848 = vmatprep.mubr.msk.f32.mxu0 %vm3037_vm2, %v3036_v10  ;;  %v2326_v59 = vld [vmem:[%s3143_s16 + $0x28] sm:$0xff] }
 0x90d   : > { %v1925_v61 = vpop.xlane.xlu1 %1924 }
 0x90e   : > { %v1929_v62 = vsub.f32 %v1841_v58, %v1925_v61  ;;  %v2325_v58 = vld [vmem:[%s3143_s16 + $0x20] sm:$0xff] }
 0x90f   : > { %v2910_v60 = vpack.c.bf16 %v2326_v59, %v2325_v58 }
 0x910   : > { %v1931_v63 = vmul.f32 1.442695, %v1929_v62 }
 0x912   : > { %2978 = vpow2.f32 %v1931_v63 }
 0x91c   : > { %v2979_v3 = vpop.eup %2978 }
 0x91d   : > { %v1935_v4 = vsel %vm536_vm3, %v2979_v3, 0.0 }
 0x952   : > { %v1919_v0 = vpop.f32.mrb[10].mxu0 }
 0x953   : > { %v2840_v1 = vpop.f32.mrb[11].mxu0  ;;  %v1926_v2 = vsel %vm536_vm3, %v1919_v0, -inf }
 0x954   : > { %1927 = vmax.xlane.f32.xlu0 %v1926_v2 }
 0x958   : > { %1936 = vadd.xlane.f32.xlu0 %v1935_v4 }
 0x96e   : > { %1945 = vrot.lane.b32.xlu0 %v3176_v14, %s3048_s25 }
 0x9e1   : > { %v1928_v5 = vpop.xlane.xlu0 %1927 }
 0x9e2   : > { %v1930_v6 = vsub.f32 %v1919_v0, %v1928_v5 }
 0x9e4   : > { %v1933_v10 = vmul.f32 1.442695, %v1930_v6 }
 0x9e5   : > { %v1937_v8 = vpop.xlane.xlu0 %1936 }
 0x9e6   : > { %2980 = vpow2.f32 %v1933_v10 }
 0x9e7   : > { %2982 = vrcp.f32 %v1937_v8 }
 0x9e9   : > { %v1946_v11 = vpop.permute.xlu0 %1945 }
 0x9ea   : > { %2842 = vmatpush3.msra.mxu1 %v1946_v11 }
 0x9eb   : > { %2895 = vmatprep.subr.bf16.mxu1 %v2894_v48 }
 0x9f0   : > { %v2981_v12 = vpop.eup %2980 }
 0x9f1   : > { %v2983_v13 = vpop.eup %2982  ;;  %v1938_v16 = vsel %vm536_vm3, %v2981_v12, 0.0 }
 0x9f2   : > { %v1942_v17 = vmul.f32 %v2983_v13, %v2979_v3  ;;  %1939 = vadd.xlane.f32.xlu1 %v1938_v16 }
 0x9f4   : > { %2844 = vmatmul.mubr.msk.f32.vlgmr.msra.gmra.mrb[20].mxu1 %vm536_vm3, %v1942_v17 }
 0x9f5   : > { %2897 = vmatpush3.bf16.msra.mxu1 %v2894_v48 }
 0x9f6   : > { %2899 = vmatprep.subr.bf16.mxu1 %v2898_v51 }
 0x9f9   : > { %2901 = vmatpush3.bf16.msra.mxu1 %v2898_v51 }
 0xa03   : > { %2021 = vrot.lane.b32.xlu1 %v3179_v15, %s3048_s25  ;;  %v2180_v15 = vlaneseq }
 0xa05   : > { %v3308_v26 = vshrl.u32 %v2180_v15, 7 }
 0xa07   : > { %v2182_v27 = vsub.s32 4, %v3308_v26  ;;  %v2217_v3 = vsub.s32 0, %v3308_v26  ;;  %v2223_v4 = vsub.s32 1, %v3308_v26  ;;  %v2445_v53 = vsub.s32 2, %v3308_v26 }
 0xa08   : > { %v2451_v54 = vsub.s32 3, %v3308_v26 }
 0xa09   : > { %v2183_v29 = vrot.slane %v3312_v28, %v2182_v27  ;;  %v2218_v5 = vrot.slane %v3312_v28, %v2217_v3 }
 0xa0a   : > { %v2452_v58 = vrot.slane %v3312_v28, %v2451_v54 }
 0xa7f   : > { %v1940_v14 = vpop.xlane.xlu1 %1939 }
 0xa80   : > { %2984 = vrcp.f32 %v1940_v14 }
 0xa83   : > { %v2022_v19 = vpop.permute.xlu1 %2021 }
 0xa84   : > { %2847 = vmatpush3.msra.mxu0 %v2022_v19  ;;  %v2328_v19 = vld [vmem:[%s3143_s16 + $0x38] sm:$0xff] }
 0xa85   : > { %2851 = vmatprep.subr.mxu0 %v532_v18 }
 0xa8a   : > { %v2985_v20 = vpop.eup %2984 }
 0xa8b   : > { %v1944_v21 = vmul.f32 %v2985_v20, %v2981_v12  ;;  %v2224_v12 = vrot.slane %v3312_v28, %v2223_v4 }
 0xa8d   : > { %2849 = vmatmul.mubr.msk.f32.vlgmr.msra.gmra.mrb[12].mxu0 %vm536_vm3, %v1944_v21  ;;  %v2665_v21 = vld [vmem:[%s414_s27] ss:$0 sm:$0xff] }
 0xa8e   : > { %2852 = vmatpush3.msra.mxu0 %v532_v18  ;;  %v2327_v18 = vld [vmem:[%s3143_s16 + $0x30] sm:$0xff] }
 0xa8f   : > { %2903 = vmatprep.subr.bf16.mxu0 %v2902_v55  ;;  %v2914_v20 = vpack.c.bf16 %v2328_v19, %v2327_v18 }
 0xac7   : > { %v2017_v22 = vpop.f32.mrb[20].mxu1 }
 0xac8   : > { %v2845_v23 = vpop.f32.mrb[21].mxu1  ;;  %2853 = vmatprep.mubr.msk.f32.mxu0 %vm536_vm3, %v2017_v22 }
 0xb60   : > { %v2093_v24 = vpop.f32.mrb[12].mxu0 }
 0xb61   : > { %v2850_v25 = vpop.f32.mrb[13].mxu0  ;;  %2854 = vmatmul.mubr.msk.f32.vlgmr.msra.gmra.mrb[6].mxu0 %vm536_vm3, %v2093_v24 }
 0xb62   : > { %2905 = vmatpush3.bf16.msra.mxu0 %v2902_v55  ;;  %v2446_v55 = vrot.slane %v3312_v28, %v2445_v53 }
 0xb63   : > { %2907 = vmatprep.subr.bf16.mxu0 %v2906_v57 }
 0xb66   : > { %2909 = vmatpush3.bf16.msra.mxu0 %v2906_v57 }
 0xb67   : > { %2911 = vmatprep.subr.bf16.mxu0 %v2910_v60 }
 0xb6a   : > { %2913 = vmatpush3.bf16.msra.mxu0 %v2910_v60 }
 0xb6b   : > { %2915 = vmatprep.subr.bf16.mxu0 %v2914_v20 }
 0xb6e   : > { %2917 = vmatpush3.bf16.msra.mxu0 %v2914_v20 }
 0xc34   : > { %v2855_v30 = vpop.f32.mrb[6].mxu0 }
 0xc35   : > { %v2185_v31 = vadd.f32 %v2855_v30, %v2183_v29  ;;  %v2169_v32 = vpop.f32.mrb[7].mxu0 }
 0xc36   : > { %v2184_v33 = vadd.f32 %v2183_v29, %v2169_v32  ;;  %v2331_v29 = vsub.s32 5, %v3308_v26 }
 0xc37   : > { %v2187_v34 = vadd.f32 %v2185_v31, %v3161_v9 }
 0xc38   : > { %v2186_v35 = vadd.f32 %v2184_v33, %v3157_v7  ;;  %v2332_v30 = vrot.slane %v3312_v28, %v2331_v29 }
 0xc39   : > { %v2191_v36 = vsel %vm447_vm1, %v2187_v34, 0.0 }
 0xc3a   : > { %2192 = vadd.xlane.f32.xlu0 %v2191_v36  ;;  %v2188_v37 = vsel %vm447_vm1, %v2186_v35, 0.0 }
 0xc3b   : > { %2189 = vadd.xlane.f32.xlu1 %v2188_v37 }
 0xcc7   : > { %v2193_v38 = vpop.xlane.xlu0 %2192 }
 0xcc8   : > { %v2196_v39 = vmul.f32 0.03125, %v2193_v38  ;;  %v2190_v40 = vpop.xlane.xlu1 %2189 }
 0xcc9   : > { %v2195_v41 = vmul.f32 0.03125, %v2190_v40 }
 0xcca   : > { %v2198_v42 = vsub.f32 %v2187_v34, %v2196_v39 }
 0xccb   : > { %v2197_v43 = vsub.f32 %v2186_v35, %v2195_v41 }
 0xccc   : > { %v2200_v44 = vmul.f32 %v2198_v42, %v2198_v42 }
 0xccd   : > { %v2199_v9 = vmul.f32 %v2197_v43, %v2197_v43 }
 0xcce   : > { %v2204_v7 = vsel %vm447_vm1, %v2200_v44, 0.0 }
 0xccf   : > { %2205 = vadd.xlane.f32.xlu1 %v2204_v7  ;;  %v2201_v45 = vsel %vm447_vm1, %v2199_v9, 0.0 }
 0xcd0   : > { %2202 = vadd.xlane.f32.xlu0 %v2201_v45 }
 0xd5c   : > { %v2206_v61 = vpop.xlane.xlu1 %2205 }
 0xd5d   : > { %v2208_v62 = vmul.f32 0.03125, %v2206_v61  ;;  %v2203_v63 = vpop.xlane.xlu0 %2202 }
 0xd5e   : > { %v2207_v0 = vmul.f32 0.03125, %v2203_v63 }
 0xd5f   : > { %v2210_v1 = vadd.f32 1e-05, %v2208_v62 }
 0xd60   : > { %v2209_v2 = vadd.f32 1e-05, %v2207_v0 }
 0xd61   : > { %2986 = vrsqrt.f32 %v2210_v1 }
 0xd62   : > { %2988 = vrsqrt.f32 %v2209_v2 }
 0xd6b   : > { %v2987_v6 = vpop.eup %2986 }
 0xd6c   : > { %v2989_v10 = vpop.eup %2988  ;;  %v2214_v8 = vmul.f32 %v2987_v6, %v2198_v42 }
 0xd6d   : > { %v2213_v11 = vmul.f32 %v2989_v10, %v2197_v43 }
 0xd6e   : > { %v2220_v13 = vmul.f32 %v2218_v5, %v2214_v8 }
 0xd6f   : > { %v2219_v16 = vmul.f32 %v2218_v5, %v2213_v11 }
 0xd70   : > { %v2226_v14 = vadd.f32 %v2224_v12, %v2220_v13 }
 0xd71   : > { %v2225_v17 = vadd.f32 %v2224_v12, %v2219_v16 }
 0xd73   : > { %2864 = vmatprep.mubr.msk.f32.mxu1 %vm447_vm1, %v2225_v17 }
 0xd74   : > { %2865 = vmatmul.mubr.msk.f32.vlgmr.msra.gmra.mrb[22].mxu1 %vm447_vm1, %v2226_v14 }
 0xe47   : > { %v2866_v22 = vpop.f32.mrb[22].mxu1 }
 0xe48   : > { %v2316_v23 = vadd.f32 %v2866_v22, %v2665_v21  ;;  %v2310_v24 = vpop.f32.mrb[23].mxu1 }
 0xe49   : > { %v2311_v25 = vadd.f32 %v2665_v21, %v2310_v24 }
 0xe4a   : > { %v2320_v27 = vmax.f32 %v2316_v23, 0.0  ;;  %v2461_v23 = vld [vmem:[%s3408_s8] sm:$0x3] (!%p2670_p5) }
 0xe4b   : > { %v2319_v15 = vmax.f32 %v2311_v25, 0.0  ;;  %v2491_v24 = vrot.slane (!%p2670_p5), %v2461_v23, %v2217_v3 }
 0xe4d   : > { %2883 = vmatprep.mubr.msk.f32.mxu0 %vm2333_vm4, %v2319_v15 }
 0xe4e   : > { %2884 = vmatmul.mubr.msk.f32.vlgmr.msra.gmra.mrb[14].mxu0 %vm2333_vm4, %v2320_v27  ;;  %v2497_v27 = vrot.slane (!%p2670_p5), %v2461_v23, %v2223_v4 }
 0xf21   : > { %v2885_v31 = vpop.f32.mrb[14].mxu0 }
 0xf22   : > { %v2412_v32 = vadd.f32 %v2885_v31, %v2332_v30  ;;  %v2406_v33 = vpop.f32.mrb[15].mxu0 }
 0xf23   : > { %v2407_v34 = vadd.f32 %v2406_v33, %v2332_v30 }
 0xf24   : > { %v2416_v35 = vadd.f32 %v2412_v32, %v2226_v14 }
 0xf25   : > { %v2415_v36 = vadd.f32 %v2407_v34, %v2225_v17 }
 0xf26   : > { %v2420_v37 = vsel %vm447_vm1, %v2416_v35, 0.0 }
 0xf27   : > { %2421 = vadd.xlane.f32.xlu1 %v2420_v37  ;;  %v2417_v38 = vsel %vm447_vm1, %v2415_v36, 0.0 }
 0xf28   : > { %2418 = vadd.xlane.f32.xlu0 %v2417_v38 }
 0xfb4   : > { %v2422_v39 = vpop.xlane.xlu1 %2421 }
 0xfb5   : > { %v2424_v40 = vmul.f32 0.03125, %v2422_v39  ;;  %v2419_v41 = vpop.xlane.xlu0 %2418 }
 0xfb6   : > { %v2423_v42 = vmul.f32 0.03125, %v2419_v41 }
 0xfb7   : > { %v2426_v43 = vsub.f32 %v2416_v35, %v2424_v40 }
 0xfb8   : > { %v2425_v44 = vsub.f32 %v2415_v36, %v2423_v42 }
 0xfb9   : > { %v2428_v9 = vmul.f32 %v2426_v43, %v2426_v43 }
 0xfba   : > { %v2427_v7 = vmul.f32 %v2425_v44, %v2425_v44 }
 0xfbb   : > { %v2432_v45 = vsel %vm447_vm1, %v2428_v9, 0.0 }
 0xfbc   : > { %2433 = vadd.xlane.f32.xlu1 %v2432_v45  ;;  %v2429_v46 = vsel %vm447_vm1, %v2427_v7, 0.0 }
 0xfbd   : > { %2430 = vadd.xlane.f32.xlu0 %v2429_v46 }
0x1049   : > { %v2434_v47 = vpop.xlane.xlu1 %2433 }
0x104a   : > { %v2436_v48 = vmul.f32 0.03125, %v2434_v47  ;;  %v2431_v49 = vpop.xlane.xlu0 %2430 }
0x104b   : > { %v2435_v50 = vmul.f32 0.03125, %v2431_v49 }
0x104c   : > { %v2438_v51 = vadd.f32 1e-05, %v2436_v48 }
0x104d   : > { %v2437_v52 = vadd.f32 1e-05, %v2435_v50 }
0x104e   : > { %2990 = vrsqrt.f32 %v2438_v51 }
0x104f   : > { %2992 = vrsqrt.f32 %v2437_v52 }
0x1058   : > { %v2991_v56 = vpop.eup %2990 }
0x1059   : > { %v2993_v57 = vpop.eup %2992  ;;  %v2442_v59 = vmul.f32 %v2991_v56, %v2426_v43 }
0x105a   : > { %v2441_v60 = vmul.f32 %v2993_v57, %v2425_v44  ;;  %2460 = sbr.rel (%p2670_p5) target bundleno = 4510 (0x119e), region = 64 }
0x105b   : > { %v2448_v61 = vmul.f32 %v2446_v55, %v2442_v59 }
0x105c   : > { %v2447_v62 = vmul.f32 %v2446_v55, %v2441_v60 }
0x105d   : > { %v2454_v63 = vadd.f32 %v2452_v58, %v2448_v61 }
0x105e   : > { %v2453_v0 = vadd.f32 %v2452_v58, %v2447_v62 }
0x105f   : > { %2456 = vst.msk [vmem:[#allocation2 + $0x8] sm:$0xff] %vm447_vm1, %v2454_v63  ;;  %v2465_v2 = vsel (!%p2670_p5), %vm447_vm1, %v2454_v63, 0.0 }
0x1060   : > { %2455 = vst.msk [vmem:[#allocation2] sm:$0xff] %vm447_vm1, %v2453_v0  ;;  %v2462_v1 = vsel (!%p2670_p5), %vm447_vm1, %v2453_v0, 0.0 }
0x1061   : > { %2463 = vadd.xlane.f32.xlu0 %v2462_v1 }
0x1065   : > { %2466 = vadd.xlane.f32.xlu0 %v2465_v2 }
0x10ee   : > { %v2464_v28 = vpop.xlane.xlu0 %2463 }
0x10ef   : > { %v2468_v5 = vmul.f32 0.03125, %v2464_v28 }
0x10f1   : > { %v2470_v6 = vsub.f32 %v2453_v0, %v2468_v5 }
0x10f2   : > { %v2467_v10 = vpop.xlane.xlu0 %2466 }
0x10f3   : > { %v2469_v8 = vmul.f32 0.03125, %v2467_v10  ;;  %v2472_v11 = vmul.f32 %v2470_v6, %v2470_v6 }
0x10f5   : > { %v2471_v12 = vsub.f32 %v2454_v63, %v2469_v8  ;;  %v2474_v13 = vsel %vm447_vm1, %v2472_v11, 0.0 }
0x10f6   : > { %2475 = vadd.xlane.f32.xlu1 %v2474_v13 }
0x10f7   : > { %v2473_v16 = vmul.f32 %v2471_v12, %v2471_v12 }
0x10f9   : > { %v2477_v17 = vsel %vm447_vm1, %v2473_v16, 0.0 }
0x10fa   : > { %2478 = vadd.xlane.f32.xlu1 %v2477_v17 }
0x1183   : > { %v2476_v14 = vpop.xlane.xlu1 %2475 }
0x1184   : > { %v2480_v18 = vmul.f32 0.03125, %v2476_v14 }
0x1186   : > { %v2482_v19 = vadd.f32 1e-05, %v2480_v18 }
0x1187   : > { %v2479_v20 = vpop.xlane.xlu1 %2478 }
0x1188   : > { %2994 = vrsqrt.f32 %v2482_v19  ;;  %v2481_v21 = vmul.f32 0.03125, %v2479_v20 }
0x118a   : > { %v2483_v22 = vadd.f32 1e-05, %v2481_v21 }
0x118c   : > { %2996 = vrsqrt.f32 %v2483_v22 }
0x1192   : > { %v2995_v25 = vpop.eup %2994 }
0x1193   : > { %v2486_v15 = vmul.f32 %v2995_v25, %v2470_v6 }
0x1195   : > { %v2492_v29 = vmul.f32 %v2491_v24, %v2486_v15 }
0x1196   : > { %v2997_v30 = vpop.eup %2996 }
0x1197   : > { %v2498_v31 = vadd.f32 %v2497_v27, %v2492_v29  ;;  %v2487_v32 = vmul.f32 %v2997_v30, %v2471_v12 }
0x1199   : > { %2500 = vst.msk [vmem:[#allocation2] sm:$0xff] %vm447_vm1, %v2498_v31  ;;  %v2493_v33 = vmul.f32 %v2491_v24, %v2487_v32 }
0x119b   : > { %v2499_v34 = vadd.f32 %v2497_v27, %v2493_v33 }
0x119d   : > { %2501 = vst.msk [vmem:[#allocation2 + $0x8] sm:$0xff] %vm447_vm1, %v2499_v34 }
0x119e PF: > { %p2928_p6 = scmp.eq.s32.totalorder %s3108_s10, 1  ;;  %s3049_s16 = smov [#allocation2]  }
0x119f   : > { %s2508_s20 = sshll.u32 %s3049_s16, 4  ;;  %s2509_s20 = int_to_ptr.vmem [resolvable:$true] %s2508_s20 }
0x11a0   : > { %s2998_s18 = scalar_lea.vmem %s2509_s20, 256  ;;  %p3005_p10 = scmp.lt.s32.totalorder %s2509_s20, %s2509_s20 }
0x11a1   : > { %p2999_p7 = scmp.ne.s32.totalorder %s2509_s20, %s2998_s18  ;;  %p3006_p11 = scmp.lt.s32.totalorder %s2998_s18, %s2998_s18 }
0x11a3   : > { %p3000_p8 = pnand %p2999_p7, %p2928_p6  ;;  %p3007_p12 = por %p3006_p11, %p3005_p10 }
0x11a5   : > { %p3001_p9 = pneg %p3000_p8 }
0x11a7   : > { %p3008_p13 = pnand %p3007_p12, %p3001_p9 }
0x11a9   : > { %3011 = shalt.err (!%p3008_p13)
}
0x11aa   : > { %s3012_s29 = scalar_lea.hbm %s3409_s9, 256 }
0x11ab   : > { %p3013_p0 = scmp.ne.s32.totalorder %s3409_s9, %s3012_s29  ;;  %p3018_p3 = scmp.lt.u32.totalorder %s3012_s29, %s3409_s9 }
0x11ad   : > { %p3014_p1 = pnand %p3013_p0, %p2928_p6 }
0x11af   : > { %p3015_p2 = pneg %p3014_p1 }
0x11b1   : > { %p3020_p4 = pnand %p3018_p3, %p3015_p2 }
0x11b3   : > { %3023 = shalt.err (!%p3020_p4)
}
0x11b4   : > { %s3050_s19 = smov 128   ;;  %s3051_s12 = smov 8  }
0x11b5   : > { %2925 = dma.vmem_to_hbm [thread:$0]  (%p2928_p6), %s2509_s20, 256, %s3409_s9, [#allocation3], %s3050_s19, %s3050_s19, %s3051_s12  }
0x11b6   : > { %3029 = dma.done.wait (%p2928_p6), [#allocation3], 256  }
0x11b7   : > { %3031 = vsyncadd (%p2928_p6), [#allocation3], 4294967040 }
0x11b8 PF: > { %s20_s30 = sadd.s32 1, %s3034_s30  }
0x11b9   : > { %p17_p5 = scmp.ge.s32.totalorder %s20_s30, 4  }
0x11bb   :  { %19 = sbr.rel (!%p17_p5) target bundleno = 1 (0x1), region = 109 }
0x11c2   :  { %2524 = vsyncpa [#allocation3], 1 }
0x11c3   :  { %2526 = vsyncpa [#allocation3 + $0x1], 1 }

</bundles_post_ra>
